<compile_context>
chip_gen: v5e
topology: v5e:2x2
jax: 0.10.0
libtpu: 0.0.40
codegen_flags: <defaults>
</compile_context>

<pallas_src>
import math
import functools

import jax
import jax.numpy as jnp
from jax import lax
from jax.experimental import pallas as pl
from jax.experimental.pallas import tpu as pltpu

LN_EPS = 1e-12  # torch.nn.LayerNorm default used by BERT


def _erf_poly(x, recip):
    # Abramowitz & Stegun 7.1.26 polynomial (|err| < 1.5e-7); only exp/mul/add/abs/select.
    a1, a2, a3, a4, a5 = 0.254829592, -0.284496736, 1.421413741, -1.453152027, 1.061405429
    p = 0.3275911
    s = jnp.where(x >= 0.0, 1.0, -1.0)
    ax = jnp.abs(x)
    t = recip(1.0 + p * ax)
    poly = ((((a5 * t + a4) * t + a3) * t + a2) * t + a1) * t
    return s * (1.0 - poly * jnp.exp(-ax * ax))


def _gelu(x, recip):
    # exact (erf-based) GELU, matching torch.nn.functional.gelu default
    return 0.5 * x * (1.0 + _erf_poly(x * (1.0 / math.sqrt(2.0)), recip))


def _layer_norm(x, gamma, beta):
    mean = jnp.mean(x, axis=-1, keepdims=True)
    var = jnp.mean(jnp.square(x - mean), axis=-1, keepdims=True)
    return (x - mean) * lax.rsqrt(var + LN_EPS) * gamma + beta


def _bert_layer_kernel(num_heads, head_dim, heads_per_block,
                       xq_ref, k_ref, v_ref, mask_ref,
                       wq_ref, bq_ref, wo_ref, bo_ref, ln1_g_ref, ln1_b_ref,
                       wi_ref, bi_ref, w2_ref, b2_ref, ln2_g_ref, ln2_b_ref,
                       out_ref,
                       acc_ref, attn_f32_ref, attn_bf16_ref):
    i_idx = pl.program_id(2)
    n_i = pl.num_programs(2)

    q_tile = xq_ref.shape[1]
    seq_len = k_ref.shape[2]
    blk = heads_per_block * head_dim
    n_hb = num_heads // heads_per_block
    scale = 1.0 / math.sqrt(head_dim)

    def recip(v):
        return pl.reciprocal(v, approx=True)

    # ---------------- attention for this query tile (runs once, at i == 0) -------------
    @pl.when(i_idx == 0)
    def _attention():
        xq = xq_ref[0]                                   # (TQ, H) f32, residual
        xq_bf = xq.astype(jnp.bfloat16)
        # hoist the additive-mask broadcast out of the head loop
        mask_b = jnp.broadcast_to(mask_ref[0], (q_tile, seq_len))
        acc_ref[...] = jnp.zeros_like(acc_ref)           # f32 accumulator for ctx @ wo

        @pl.loop(0, n_hb)
        def _head_block(hb):
            # Q projection for this head block, scale folded in once (f32), then bf16.
            q_blk = (jnp.dot(xq_bf, wq_ref[hb], preferred_element_type=jnp.float32)
                     + bq_ref[hb]) * scale
            q_blk = q_blk.astype(jnp.bfloat16)            # (TQ, blk)
            k_blk = k_ref[0, hb]                          # (S,  blk) bf16
            v_blk = v_ref[0, hb]                          # (S,  blk) bf16

            parts = []
            for hh in range(heads_per_block):             # tiny static unroll (<= 2 real)
                sl = slice(hh * head_dim, (hh + 1) * head_dim)
                # q_h @ k_h^T without materializing a transpose (contract last dims)
                sc = lax.dot_general(q_blk[:, sl], k_blk[:, sl],
                                     (((1,), (1,)), ((), ())),
                                     preferred_element_type=jnp.float32) + mask_b
                sc = sc - jnp.max(sc, axis=-1, keepdims=True)
                pr = jnp.exp(sc)
                pr = pr * recip(jnp.sum(pr, axis=-1, keepdims=True))
                parts.append(jnp.dot(pr.astype(jnp.bfloat16), v_blk[:, sl],
                                     preferred_element_type=jnp.float32))
            ctx = parts[0] if heads_per_block == 1 else jnp.concatenate(parts, axis=1)
            # accumulate this head block's wo contribution (lane-dense (TQ, H) store)
            acc_ref[...] += jnp.dot(ctx.astype(jnp.bfloat16), wo_ref[hb],
                                    preferred_element_type=jnp.float32)

        # BertSelfOutput: dense(+bias) + residual + LayerNorm (dropout = identity)
        attn = acc_ref[...] + bo_ref[...]
        attn_ln = _layer_norm(attn + xq, ln1_g_ref[...], ln1_b_ref[...])
        attn_f32_ref[...] = attn_ln                       # f32, for the final residual
        attn_bf16_ref[...] = attn_ln.astype(jnp.bfloat16)  # cached FFN matmul operand
        acc_ref[...] = jnp.zeros_like(acc_ref)            # reuse as the FFN accumulator

    # ---------------- FFN: this intermediate tile (streamed wi / w2) -------------------
    inter = jnp.dot(attn_bf16_ref[...], wi_ref[...],
                    preferred_element_type=jnp.float32) + bi_ref[...]
    inter = _gelu(inter, recip)                           # (TQ, TI) f32
    acc_ref[...] += jnp.dot(inter.astype(jnp.bfloat16), w2_ref[...],
                            preferred_element_type=jnp.float32)

    # ---------------- finalize: bias + residual + LayerNorm at the last I-tile ---------
    @pl.when(i_idx == n_i - 1)
    def _finalize():
        ffn = acc_ref[...] + b2_ref[...]
        out_ref[0] = _layer_norm(ffn + attn_f32_ref[...], ln2_g_ref[...], ln2_b_ref[...])


def bert_layer_forward(hidden_states, attention_mask, params, num_heads,
                       q_tile=None, i_tile=None):
    B, S, H = hidden_states.shape
    I = params["wi"].shape[1]
    head_dim = H // num_heads
    assert num_heads * head_dim == H

    # largest divisor of num_heads with heads_per_block * head_dim <= 128 (lane width)
    max_hb = max(1, 128 // head_dim)
    heads_per_block = 1
    for d in range(1, num_heads + 1):
        if num_heads % d == 0 and d <= max_hb:
            heads_per_block = d
    blk = heads_per_block * head_dim
    n_hb = num_heads // heads_per_block

    if q_tile is None:
        q_tile = min(S, 512)
        # keep >= 2 steps on the parallel axes for v7x's two TensorCores
        if B == 1 and q_tile == S and (S // 2) % 8 == 0:
            q_tile = S // 2
    if i_tile is None:
        i_tile = min(I, 1024)
    assert S % q_tile == 0 and I % i_tile == 0
    n_q = S // q_tile
    n_i = I // i_tile

    mask = attention_mask.reshape(B, 1, S).astype(jnp.float32)

    # ---- hoisted K/V projection: computed once per batch (XLA), bf16, head-blocked ----
    x_bf = hidden_states.astype(jnp.bfloat16)
    kv = jnp.dot(x_bf.reshape(B * S, H), params["wkv"],
                 preferred_element_type=jnp.float32).reshape(B, S, 2 * H) + params["bkv"]
    k_bf = kv[..., :H].astype(jnp.bfloat16).reshape(B, S, n_hb, blk).transpose(0, 2, 1, 3)
    v_bf = kv[..., H:].astype(jnp.bfloat16).reshape(B, S, n_hb, blk).transpose(0, 2, 1, 3)

    # head-blocked layouts for Q projection / output projection weights
    wq_hb = params["wq"].reshape(H, n_hb, blk).transpose(1, 0, 2)   # (n_hb, H, blk)
    bq_hb = params["bq"].reshape(n_hb, 1, blk)                      # (n_hb, 1, blk)
    wo_hb = params["wo"].reshape(n_hb, blk, H)                      # (n_hb, blk, H)

    def resident(shape):
        zeros = (0,) * len(shape)
        return pl.BlockSpec(shape, lambda b, s, i, z=zeros: z)      # DMA'd once, resident

    in_specs = [
        pl.BlockSpec((1, q_tile, H), lambda b, s, i: (b, s, 0)),        # hidden (Q/resid)
        pl.BlockSpec((1, n_hb, S, blk), lambda b, s, i: (b, 0, 0, 0)),  # K (bf16)
        pl.BlockSpec((1, n_hb, S, blk), lambda b, s, i: (b, 0, 0, 0)),  # V (bf16)
        pl.BlockSpec((1, 1, S), lambda b, s, i: (b, 0, 0)),             # additive mask
        resident((n_hb, H, blk)), resident((n_hb, 1, blk)),             # wq, bq
        resident((n_hb, blk, H)), resident((1, H)),                     # wo, bo
        resident((1, H)), resident((1, H)),                             # ln1 gamma/beta
        pl.BlockSpec((H, i_tile), lambda b, s, i: (0, i)),              # wi (streamed)
        pl.BlockSpec((1, i_tile), lambda b, s, i: (0, i)),              # bi (streamed)
        pl.BlockSpec((i_tile, H), lambda b, s, i: (i, 0)),              # w2 (streamed)
        resident((1, H)),                                               # b2
        resident((1, H)), resident((1, H)),                             # ln2 gamma/beta
    ]

    # Size the scoped-VMEM limit from the actual chip, with headroom (v7x has 64 MiB).
    try:
        vmem_cap = pltpu.get_tpu_info().vmem_capacity_bytes
    except Exception:
        vmem_cap = 64 * 1024 * 1024
    vmem_limit = min(int(vmem_cap * 7 // 8), 100 * 1024 * 1024)

    kernel = functools.partial(_bert_layer_kernel, num_heads, head_dim, heads_per_block)
    return pl.pallas_call(
        kernel,
        out_shape=jax.ShapeDtypeStruct((B, S, H), jnp.float32),
        grid=(B, n_q, n_i),
        in_specs=in_specs,
        # output block revisited across the I axis; written only at the last I step
        out_specs=pl.BlockSpec((1, q_tile, H), lambda b, s, i: (b, s, 0)),
        scratch_shapes=[
            pltpu.VMEM((q_tile, H), jnp.float32),    # attn-wo / FFN f32 accumulator
            pltpu.VMEM((q_tile, H), jnp.float32),    # post-LN1 attention output (f32)
            pltpu.VMEM((q_tile, H), jnp.bfloat16),   # post-LN1 attention output (bf16)
        ],
        compiler_params=pltpu.CompilerParams(
            dimension_semantics=("parallel", "parallel", "arbitrary"),
            vmem_limit_bytes=vmem_limit,
        ),
    )(hidden_states, k_bf, v_bf, mask,
      wq_hb, bq_hb, wo_hb, params["bo"], params["ln1_g"], params["ln1_b"],
      params["wi"], params["bi"], params["w2"], params["b2"],
      params["ln2_g"], params["ln2_b"])


def bert_layer_reference(hidden_states, attention_mask, params, num_heads):
    """Pure-JAX reference with the same bf16-matmul / f32-accumulate math."""
    B, S, H = hidden_states.shape
    head_dim = H // num_heads
    mask = attention_mask.reshape(B, 1, S).astype(jnp.float32)

    def recip(v):
        return 1.0 / v

    def one(x, m):
        xb = x.astype(jnp.bfloat16)
        q = jnp.dot(xb, params["wq"], preferred_element_type=jnp.float32) + params["bq"]
        kv = jnp.dot(xb, params["wkv"], preferred_element_type=jnp.float32) + params["bkv"]
        k, v = kv[:, :H], kv[:, H:]
        qh = q.reshape(S, num_heads, head_dim).transpose(1, 0, 2).astype(jnp.bfloat16)
        kh = k.reshape(S, num_heads, head_dim).transpose(1, 0, 2).astype(jnp.bfloat16)
        vh = v.reshape(S, num_heads, head_dim).transpose(1, 0, 2).astype(jnp.bfloat16)
        sc = jnp.einsum("hqd,hkd->hqk", qh, kh,
                        preferred_element_type=jnp.float32) / math.sqrt(head_dim) + m[None]
        pr = jax.nn.softmax(sc, axis=-1)
        ctx = jnp.einsum("hqk,hkd->hqd", pr.astype(jnp.bfloat16), vh,
                         preferred_element_type=jnp.float32)
        ctx = ctx.transpose(1, 0, 2).reshape(S, H)
        attn = jnp.dot(ctx.astype(jnp.bfloat16), params["wo"],
                       preferred_element_type=jnp.float32) + params["bo"]
        attn = _layer_norm(attn + x, params["ln1_g"], params["ln1_b"])
        inter = jnp.dot(attn.astype(jnp.bfloat16), params["wi"],
                        preferred_element_type=jnp.float32) + params["bi"]
        inter = _gelu(inter, recip)
        ffn = jnp.dot(inter.astype(jnp.bfloat16), params["w2"],
                      preferred_element_type=jnp.float32) + params["b2"]
        return _layer_norm(ffn + attn, params["ln2_g"], params["ln2_b"])

    return jax.vmap(one)(hidden_states, mask)


def init_params(key, H, I):
    ks = jax.random.split(key, 16)
    f32 = jnp.float32

    def w(k, shape):  # weights stored bf16 (MXU-native)
        return (0.02 * jax.random.normal(k, shape, dtype=f32)).astype(jnp.bfloat16)

    def b(k, shape):  # biases / LN params stay f32
        return 0.02 * jax.random.normal(k, shape, dtype=f32)

    wk_, wv_ = w(ks[1], (H, H)), w(ks[2], (H, H))
    return {
        "wq": w(ks[0], (H, H)), "bq": b(ks[6], (1, H)),
        "wkv": jnp.concatenate([wk_, wv_], axis=1), "bkv": b(ks[7], (1, 2 * H)),
        "wo": w(ks[3], (H, H)), "bo": b(ks[8], (1, H)),
        "ln1_g": 1.0 + 0.1 * jax.random.normal(ks[10], (1, H), dtype=f32),
        "ln1_b": 0.1 * jax.random.normal(ks[11], (1, H), dtype=f32),
        "wi": w(ks[4], (H, I)), "bi": b(ks[9], (1, I)),
        "w2": w(ks[5], (I, H)), "b2": b(ks[12], (1, H)),
        "ln2_g": 1.0 + 0.1 * jax.random.normal(ks[13], (1, H), dtype=f32),
        "ln2_b": 0.1 * jax.random.normal(ks[14], (1, H), dtype=f32),
    }


if __name__ == "__main__":
    # small shapes; q_tile / i_tile chosen so the query-tile and I-tile grid axes each
    # have 2 steps and all tiling / accumulator paths are exercised.
    B, S, H, NH, I = 2, 16, 32, 4, 256
    key = jax.random.PRNGKey(0)
    k_x, k_p = jax.random.split(key)

    hidden_states = jax.random.normal(k_x, (B, S, H), dtype=jnp.float32)
    # extended additive attention mask (0 = attend, -10000 = masked); mask the last 3
    # key positions of the second batch element to exercise the mask path.
    attention_mask = jnp.zeros((B, 1, 1, S), jnp.float32)
    attention_mask = attention_mask.at[1, :, :, S - 3:].set(-10000.0)

    params = init_params(k_p, H, I)

    out = bert_layer_forward(hidden_states, attention_mask, params, NH,
                             q_tile=8, i_tile=128)
    out = jax.block_until_ready(out)

    ref = bert_layer_reference(hidden_states, attention_mask, params, NH)
    assert out.shape == (B, S, H)
    max_err = float(jnp.max(jnp.abs(out - ref)))
    assert jnp.allclose(out, ref, atol=1e-2, rtol=1e-2), max_err

    print("KERNEL_OK")
</pallas_src>

<mosaic_0001>
module attributes {stable_mosaic.version = 11 : i64} {
  func.func @_bert_layer_kernel(%arg0: i32, %arg1: i32, %arg2: i32, %arg3: memref<1x8x32xf32, #tpu.memory_space<vmem>>, %arg4: memref<1x1x16x32xbf16, #tpu.memory_space<vmem>>, %arg5: memref<1x1x16x32xbf16, #tpu.memory_space<vmem>>, %arg6: memref<1x1x16xf32, #tpu.memory_space<vmem>>, %arg7: memref<1x32x32xbf16, #tpu.memory_space<vmem>>, %arg8: memref<1x1x32xf32, #tpu.memory_space<vmem>>, %arg9: memref<1x32x32xbf16, #tpu.memory_space<vmem>>, %arg10: memref<1x32xf32, #tpu.memory_space<vmem>>, %arg11: memref<1x32xf32, #tpu.memory_space<vmem>>, %arg12: memref<1x32xf32, #tpu.memory_space<vmem>>, %arg13: memref<32x128xbf16, #tpu.memory_space<vmem>>, %arg14: memref<1x128xf32, #tpu.memory_space<vmem>>, %arg15: memref<128x32xbf16, #tpu.memory_space<vmem>>, %arg16: memref<1x32xf32, #tpu.memory_space<vmem>>, %arg17: memref<1x32xf32, #tpu.memory_space<vmem>>, %arg18: memref<1x32xf32, #tpu.memory_space<vmem>>, %arg19: memref<1x8x32xf32, #tpu.memory_space<vmem>>, %arg20: memref<8x32xf32, #tpu.memory_space<vmem>>, %arg21: memref<8x32xf32, #tpu.memory_space<vmem>>, %arg22: memref<8x32xbf16, #tpu.memory_space<vmem>>) attributes {dimension_semantics = [#tpu.dimension_semantics<parallel>, #tpu.dimension_semantics<parallel>, #tpu.dimension_semantics<arbitrary>], iteration_bounds = array<i64: 2, 2, 2>, scalar_prefetch = 0 : i64, scratch_operands = 3 : i64, tpu.core_type = #tpu.core_type<tc>, window_params = [{transform_indices = @transform_0, window_bounds = array<i64: 1, 8, 32>}, {transform_indices = @transform_1, window_bounds = array<i64: 1, 1, 16, 32>}, {transform_indices = @transform_2, window_bounds = array<i64: 1, 1, 16, 32>}, {transform_indices = @transform_3, window_bounds = array<i64: 1, 1, 16>}, {pipeline_mode = #tpu.pipeline_mode<synchronous>, transform_indices = @transform_4, window_bounds = array<i64: 1, 32, 32>}, {pipeline_mode = #tpu.pipeline_mode<synchronous>, transform_indices = @transform_5, window_bounds = array<i64: 1, 1, 32>}, {pipeline_mode = #tpu.pipeline_mode<synchronous>, transform_indices = @transform_6, window_bounds = array<i64: 1, 32, 32>}, {pipeline_mode = #tpu.pipeline_mode<synchronous>, transform_indices = @transform_7, window_bounds = array<i64: 1, 32>}, {pipeline_mode = #tpu.pipeline_mode<synchronous>, transform_indices = @transform_8, window_bounds = array<i64: 1, 32>}, {pipeline_mode = #tpu.pipeline_mode<synchronous>, transform_indices = @transform_9, window_bounds = array<i64: 1, 32>}, {transform_indices = @transform_10, window_bounds = array<i64: 32, 128>}, {transform_indices = @transform_11, window_bounds = array<i64: 1, 128>}, {transform_indices = @transform_12, window_bounds = array<i64: 128, 32>}, {pipeline_mode = #tpu.pipeline_mode<synchronous>, transform_indices = @transform_13, window_bounds = array<i64: 1, 32>}, {pipeline_mode = #tpu.pipeline_mode<synchronous>, transform_indices = @transform_14, window_bounds = array<i64: 1, 32>}, {pipeline_mode = #tpu.pipeline_mode<synchronous>, transform_indices = @transform_15, window_bounds = array<i64: 1, 32>}, {transform_indices = @transform_16, window_bounds = array<i64: 1, 8, 32>}]} {
    %c0_i32 = arith.constant 0 : i32
    %0 = arith.cmpi eq, %arg2, %c0_i32 : i32
    %1 = arith.extui %0 : i1 to i32
    %c0_i32_0 = arith.constant 0 : i32
    %2 = arith.cmpi ne, %1, %c0_i32_0 : i32
    scf.if %2 {
      %c0_29 = arith.constant 0 : index
      %c0_30 = arith.constant 0 : index
      %c0_31 = arith.constant 0 : index
      %58 = vector.load %arg3[%c0_29, %c0_30, %c0_31] : memref<1x8x32xf32, #tpu.memory_space<vmem>>, vector<1x8x32xf32>
      %59 = vector.shape_cast %58 : vector<1x8x32xf32> to vector<8x32xf32>
      %60 = arith.truncf %59 : vector<8x32xf32> to vector<8x32xbf16>
      %c0_32 = arith.constant 0 : index
      %c0_33 = arith.constant 0 : index
      %c0_34 = arith.constant 0 : index
      %61 = vector.load %arg6[%c0_32, %c0_33, %c0_34] : memref<1x1x16xf32, #tpu.memory_space<vmem>>, vector<1x1x16xf32>
      %62 = vector.shape_cast %61 : vector<1x1x16xf32> to vector<1x16xf32>
      %63 = vector.shape_cast %62 : vector<1x16xf32> to vector<1x16xf32>
      %64 = vector.broadcast %63 : vector<1x16xf32> to vector<8x16xf32>
      %cst_35 = arith.constant 0.000000e+00 : f32
      %65 = vector.broadcast %cst_35 : f32 to vector<8x32xf32>
      %c0_36 = arith.constant 0 : index
      %c0_37 = arith.constant 0 : index
      %66 = vector.load %arg20[%c0_36, %c0_37] : memref<8x32xf32, #tpu.memory_space<vmem>>, vector<8x32xf32>
      tpu.vector_store %arg20[%c0_36, %c0_37], %65 {strides = array<i32>} : memref<8x32xf32, #tpu.memory_space<vmem>>, vector<8x32xf32>,
      %c0_i32_38 = arith.constant 0 : i32
      %c1_i32_39 = arith.constant 1 : i32
      %67 = arith.muli %c0_i32_38, %c1_i32_39 : i32
      %c0_i32_40 = arith.constant 0 : i32
      %68 = arith.addi %c0_i32_40, %67 : i32
      %69 = arith.index_cast %68 : i32 to index
      %c0_41 = arith.constant 0 : index
      %c0_42 = arith.constant 0 : index
      %70 = vector.load %arg7[%69, %c0_41, %c0_42] : memref<1x32x32xbf16, #tpu.memory_space<vmem>>, vector<1x32x32xbf16>
      %71 = vector.shape_cast %70 : vector<1x32x32xbf16> to vector<32x32xbf16>
      %cst_43 = arith.constant dense<0.000000e+00> : vector<8x32xf32>
      %72 = tpu.matmul %60, %71, %cst_43 {dimension_numbers = #tpu.dot_dimension_numbers<[1], [0], [0], [1], [0, 0, 1, 1], [], []>} : vector<8x32xbf16>, vector<32x32xbf16>, vector<8x32xf32> -> vector<8x32xf32>
      %73 = arith.index_cast %68 : i32 to index
      %c0_44 = arith.constant 0 : index
      %c0_45 = arith.constant 0 : index
      %74 = vector.load %arg8[%73, %c0_44, %c0_45] : memref<1x1x32xf32, #tpu.memory_space<vmem>>, vector<1x1x32xf32>
      %75 = vector.shape_cast %74 : vector<1x1x32xf32> to vector<1x32xf32>
      %76 = vector.broadcast %75 : vector<1x32xf32> to vector<8x32xf32>
      %77 = arith.addf %72, %76 : vector<8x32xf32>
      %cst_46 = arith.constant 0.353553385 : f32
      %78 = vector.broadcast %cst_46 : f32 to vector<8x32xf32>
      %79 = arith.mulf %77, %78 : vector<8x32xf32>
      %80 = arith.truncf %79 : vector<8x32xf32> to vector<8x32xbf16>
      %c0_47 = arith.constant 0 : index
      %81 = arith.index_cast %68 : i32 to index
      %c0_48 = arith.constant 0 : index
      %c0_49 = arith.constant 0 : index
      %82 = vector.load %arg4[%c0_47, %81, %c0_48, %c0_49] : memref<1x1x16x32xbf16, #tpu.memory_space<vmem>>, vector<1x1x16x32xbf16>
      %83 = vector.shape_cast %82 : vector<1x1x16x32xbf16> to vector<16x32xbf16>
      %c0_50 = arith.constant 0 : index
      %84 = arith.index_cast %68 : i32 to index
      %c0_51 = arith.constant 0 : index
      %c0_52 = arith.constant 0 : index
      %85 = vector.load %arg5[%c0_50, %84, %c0_51, %c0_52] : memref<1x1x16x32xbf16, #tpu.memory_space<vmem>>, vector<1x1x16x32xbf16>
      %86 = vector.shape_cast %85 : vector<1x1x16x32xbf16> to vector<16x32xbf16>
      %87 = vector.extract_strided_slice %80 {offsets = [0, 0], sizes = [8, 8], strides = [1, 1]} : vector<8x32xbf16> to vector<8x8xbf16>
      %88 = vector.extract_strided_slice %83 {offsets = [0, 0], sizes = [16, 8], strides = [1, 1]} : vector<16x32xbf16> to vector<16x8xbf16>
      %cst_53 = arith.constant dense<0.000000e+00> : vector<8x16xf32>
      %89 = tpu.matmul %87, %88, %cst_53 {dimension_numbers = #tpu.dot_dimension_numbers<[1], [1], [0], [0], [0, 0, 1, 0], [], []>} : vector<8x8xbf16>, vector<16x8xbf16>, vector<8x16xf32> -> vector<8x16xf32>
      %90 = arith.addf %89, %64 : vector<8x16xf32>
      %cst_54 = arith.constant dense<0xFF800000> : vector<8xf32>
      %91 = vector.multi_reduction <maximumf>, %90, %cst_54 [1] : vector<8x16xf32> to vector<8xf32>
      %92 = vector.shape_cast %91 : vector<8xf32> to vector<8x1xf32>
      %93 = vector.broadcast %92 : vector<8x1xf32> to vector<8x16xf32>
      %94 = arith.subf %90, %93 : vector<8x16xf32>
      %95 = math.exp %94 : vector<8x16xf32>
      %cst_55 = arith.constant dense<0.000000e+00> : vector<8xf32>
      %96 = vector.multi_reduction <add>, %95, %cst_55 [1] : vector<8x16xf32> to vector<8xf32>
      %97 = vector.shape_cast %96 : vector<8xf32> to vector<8x1xf32>
      %98 = tpu.reciprocal %97 {approx = true} : vector<8x1xf32> -> vector<8x1xf32>
      %99 = vector.broadcast %98 : vector<8x1xf32> to vector<8x16xf32>
      %100 = arith.mulf %95, %99 : vector<8x16xf32>
      %101 = arith.truncf %100 : vector<8x16xf32> to vector<8x16xbf16>
      %102 = vector.extract_strided_slice %86 {offsets = [0, 0], sizes = [16, 8], strides = [1, 1]} : vector<16x32xbf16> to vector<16x8xbf16>
      %cst_56 = arith.constant dense<0.000000e+00> : vector<8x8xf32>
      %103 = tpu.matmul %101, %102, %cst_56 {dimension_numbers = #tpu.dot_dimension_numbers<[1], [0], [0], [1], [0, 0, 1, 1], [], []>} : vector<8x16xbf16>, vector<16x8xbf16>, vector<8x8xf32> -> vector<8x8xf32>
      %104 = vector.extract_strided_slice %80 {offsets = [0, 8], sizes = [8, 8], strides = [1, 1]} : vector<8x32xbf16> to vector<8x8xbf16>
      %105 = vector.extract_strided_slice %83 {offsets = [0, 8], sizes = [16, 8], strides = [1, 1]} : vector<16x32xbf16> to vector<16x8xbf16>
      %cst_57 = arith.constant dense<0.000000e+00> : vector<8x16xf32>
      %106 = tpu.matmul %104, %105, %cst_57 {dimension_numbers = #tpu.dot_dimension_numbers<[1], [1], [0], [0], [0, 0, 1, 0], [], []>} : vector<8x8xbf16>, vector<16x8xbf16>, vector<8x16xf32> -> vector<8x16xf32>
      %107 = arith.addf %106, %64 : vector<8x16xf32>
      %cst_58 = arith.constant dense<0xFF800000> : vector<8xf32>
      %108 = vector.multi_reduction <maximumf>, %107, %cst_58 [1] : vector<8x16xf32> to vector<8xf32>
      %109 = vector.shape_cast %108 : vector<8xf32> to vector<8x1xf32>
      %110 = vector.broadcast %109 : vector<8x1xf32> to vector<8x16xf32>
      %111 = arith.subf %107, %110 : vector<8x16xf32>
      %112 = math.exp %111 : vector<8x16xf32>
      %cst_59 = arith.constant dense<0.000000e+00> : vector<8xf32>
      %113 = vector.multi_reduction <add>, %112, %cst_59 [1] : vector<8x16xf32> to vector<8xf32>
      %114 = vector.shape_cast %113 : vector<8xf32> to vector<8x1xf32>
      %115 = tpu.reciprocal %114 {approx = true} : vector<8x1xf32> -> vector<8x1xf32>
      %116 = vector.broadcast %115 : vector<8x1xf32> to vector<8x16xf32>
      %117 = arith.mulf %112, %116 : vector<8x16xf32>
      %118 = arith.truncf %117 : vector<8x16xf32> to vector<8x16xbf16>
      %119 = vector.extract_strided_slice %86 {offsets = [0, 8], sizes = [16, 8], strides = [1, 1]} : vector<16x32xbf16> to vector<16x8xbf16>
      %cst_60 = arith.constant dense<0.000000e+00> : vector<8x8xf32>
      %120 = tpu.matmul %118, %119, %cst_60 {dimension_numbers = #tpu.dot_dimension_numbers<[1], [0], [0], [1], [0, 0, 1, 1], [], []>} : vector<8x16xbf16>, vector<16x8xbf16>, vector<8x8xf32> -> vector<8x8xf32>
      %121 = vector.extract_strided_slice %80 {offsets = [0, 16], sizes = [8, 8], strides = [1, 1]} : vector<8x32xbf16> to vector<8x8xbf16>
      %122 = vector.extract_strided_slice %83 {offsets = [0, 16], sizes = [16, 8], strides = [1, 1]} : vector<16x32xbf16> to vector<16x8xbf16>
      %cst_61 = arith.constant dense<0.000000e+00> : vector<8x16xf32>
      %123 = tpu.matmul %121, %122, %cst_61 {dimension_numbers = #tpu.dot_dimension_numbers<[1], [1], [0], [0], [0, 0, 1, 0], [], []>} : vector<8x8xbf16>, vector<16x8xbf16>, vector<8x16xf32> -> vector<8x16xf32>
      %124 = arith.addf %123, %64 : vector<8x16xf32>
      %cst_62 = arith.constant dense<0xFF800000> : vector<8xf32>
      %125 = vector.multi_reduction <maximumf>, %124, %cst_62 [1] : vector<8x16xf32> to vector<8xf32>
      %126 = vector.shape_cast %125 : vector<8xf32> to vector<8x1xf32>
      %127 = vector.broadcast %126 : vector<8x1xf32> to vector<8x16xf32>
      %128 = arith.subf %124, %127 : vector<8x16xf32>
      %129 = math.exp %128 : vector<8x16xf32>
      %cst_63 = arith.constant dense<0.000000e+00> : vector<8xf32>
      %130 = vector.multi_reduction <add>, %129, %cst_63 [1] : vector<8x16xf32> to vector<8xf32>
      %131 = vector.shape_cast %130 : vector<8xf32> to vector<8x1xf32>
      %132 = tpu.reciprocal %131 {approx = true} : vector<8x1xf32> -> vector<8x1xf32>
      %133 = vector.broadcast %132 : vector<8x1xf32> to vector<8x16xf32>
      %134 = arith.mulf %129, %133 : vector<8x16xf32>
      %135 = arith.truncf %134 : vector<8x16xf32> to vector<8x16xbf16>
      %136 = vector.extract_strided_slice %86 {offsets = [0, 16], sizes = [16, 8], strides = [1, 1]} : vector<16x32xbf16> to vector<16x8xbf16>
      %cst_64 = arith.constant dense<0.000000e+00> : vector<8x8xf32>
      %137 = tpu.matmul %135, %136, %cst_64 {dimension_numbers = #tpu.dot_dimension_numbers<[1], [0], [0], [1], [0, 0, 1, 1], [], []>} : vector<8x16xbf16>, vector<16x8xbf16>, vector<8x8xf32> -> vector<8x8xf32>
      %138 = vector.extract_strided_slice %80 {offsets = [0, 24], sizes = [8, 8], strides = [1, 1]} : vector<8x32xbf16> to vector<8x8xbf16>
      %139 = vector.extract_strided_slice %83 {offsets = [0, 24], sizes = [16, 8], strides = [1, 1]} : vector<16x32xbf16> to vector<16x8xbf16>
      %cst_65 = arith.constant dense<0.000000e+00> : vector<8x16xf32>
      %140 = tpu.matmul %138, %139, %cst_65 {dimension_numbers = #tpu.dot_dimension_numbers<[1], [1], [0], [0], [0, 0, 1, 0], [], []>} : vector<8x8xbf16>, vector<16x8xbf16>, vector<8x16xf32> -> vector<8x16xf32>
      %141 = arith.addf %140, %64 : vector<8x16xf32>
      %cst_66 = arith.constant dense<0xFF800000> : vector<8xf32>
      %142 = vector.multi_reduction <maximumf>, %141, %cst_66 [1] : vector<8x16xf32> to vector<8xf32>
      %143 = vector.shape_cast %142 : vector<8xf32> to vector<8x1xf32>
      %144 = vector.broadcast %143 : vector<8x1xf32> to vector<8x16xf32>
      %145 = arith.subf %141, %144 : vector<8x16xf32>
      %146 = math.exp %145 : vector<8x16xf32>
      %cst_67 = arith.constant dense<0.000000e+00> : vector<8xf32>
      %147 = vector.multi_reduction <add>, %146, %cst_67 [1] : vector<8x16xf32> to vector<8xf32>
      %148 = vector.shape_cast %147 : vector<8xf32> to vector<8x1xf32>
      %149 = tpu.reciprocal %148 {approx = true} : vector<8x1xf32> -> vector<8x1xf32>
      %150 = vector.broadcast %149 : vector<8x1xf32> to vector<8x16xf32>
      %151 = arith.mulf %146, %150 : vector<8x16xf32>
      %152 = arith.truncf %151 : vector<8x16xf32> to vector<8x16xbf16>
      %153 = vector.extract_strided_slice %86 {offsets = [0, 24], sizes = [16, 8], strides = [1, 1]} : vector<16x32xbf16> to vector<16x8xbf16>
      %cst_68 = arith.constant dense<0.000000e+00> : vector<8x8xf32>
      %154 = tpu.matmul %152, %153, %cst_68 {dimension_numbers = #tpu.dot_dimension_numbers<[1], [0], [0], [1], [0, 0, 1, 1], [], []>} : vector<8x16xbf16>, vector<16x8xbf16>, vector<8x8xf32> -> vector<8x8xf32>
      %155 = tpu.concatenate %103, %120, %137, %154 in 1 : vector<8x8xf32>, vector<8x8xf32>, vector<8x8xf32>, vector<8x8xf32> -> vector<8x32xf32>
      %c0_69 = arith.constant 0 : index
      %c0_70 = arith.constant 0 : index
      %156 = vector.load %arg20[%c0_69, %c0_70] : memref<8x32xf32, #tpu.memory_space<vmem>>, vector<8x32xf32>
      %157 = arith.truncf %155 : vector<8x32xf32> to vector<8x32xbf16>
      %158 = arith.index_cast %68 : i32 to index
      %c0_71 = arith.constant 0 : index
      %c0_72 = arith.constant 0 : index
      %159 = vector.load %arg9[%158, %c0_71, %c0_72] : memref<1x32x32xbf16, #tpu.memory_space<vmem>>, vector<1x32x32xbf16>
      %160 = vector.shape_cast %159 : vector<1x32x32xbf16> to vector<32x32xbf16>
      %cst_73 = arith.constant dense<0.000000e+00> : vector<8x32xf32>
      %161 = tpu.matmul %157, %160, %cst_73 {dimension_numbers = #tpu.dot_dimension_numbers<[1], [0], [0], [1], [0, 0, 1, 1], [], []>} : vector<8x32xbf16>, vector<32x32xbf16>, vector<8x32xf32> -> vector<8x32xf32>
      %162 = arith.addf %156, %161 : vector<8x32xf32>
      %c0_74 = arith.constant 0 : index
      %c0_75 = arith.constant 0 : index
      %163 = vector.load %arg20[%c0_74, %c0_75] : memref<8x32xf32, #tpu.memory_space<vmem>>, vector<8x32xf32>
      tpu.vector_store %arg20[%c0_74, %c0_75], %162 {strides = array<i32>} : memref<8x32xf32, #tpu.memory_space<vmem>>, vector<8x32xf32>,
      %c1_i32_76 = arith.constant 1 : i32
      %c0_77 = arith.constant 0 : index
      %c0_78 = arith.constant 0 : index
      %164 = vector.load %arg20[%c0_77, %c0_78] : memref<8x32xf32, #tpu.memory_space<vmem>>, vector<8x32xf32>
      %c0_79 = arith.constant 0 : index
      %c0_80 = arith.constant 0 : index
      %165 = vector.load %arg10[%c0_79, %c0_80] : memref<1x32xf32, #tpu.memory_space<vmem>>, vector<1x32xf32>
      %166 = vector.broadcast %165 : vector<1x32xf32> to vector<8x32xf32>
      %167 = arith.addf %164, %166 : vector<8x32xf32>
      %168 = arith.addf %167, %59 : vector<8x32xf32>
      %c0_81 = arith.constant 0 : index
      %c0_82 = arith.constant 0 : index
      %169 = vector.load %arg11[%c0_81, %c0_82] : memref<1x32xf32, #tpu.memory_space<vmem>>, vector<1x32xf32>
      %c0_83 = arith.constant 0 : index
      %c0_84 = arith.constant 0 : index
      %170 = vector.load %arg12[%c0_83, %c0_84] : memref<1x32xf32, #tpu.memory_space<vmem>>, vector<1x32xf32>
      %cst_85 = arith.constant dense<0.000000e+00> : vector<8xf32>
      %171 = vector.multi_reduction <add>, %168, %cst_85 [1] : vector<8x32xf32> to vector<8xf32>
      %172 = vector.shape_cast %171 : vector<8xf32> to vector<8x1xf32>
      %cst_86 = arith.constant 3.200000e+01 : f32
      %173 = vector.broadcast %cst_86 : f32 to vector<8x1xf32>
      %174 = arith.divf %172, %173 : vector<8x1xf32>
      %175 = vector.broadcast %174 : vector<8x1xf32> to vector<8x32xf32>
      %176 = arith.subf %168, %175 : vector<8x32xf32>
      %177 = arith.mulf %176, %176 : vector<8x32xf32>
      %cst_87 = arith.constant dense<0.000000e+00> : vector<8xf32>
      %178 = vector.multi_reduction <add>, %177, %cst_87 [1] : vector<8x32xf32> to vector<8xf32>
      %179 = vector.shape_cast %178 : vector<8xf32> to vector<8x1xf32>
      %cst_88 = arith.constant 3.200000e+01 : f32
      %180 = vector.broadcast %cst_88 : f32 to vector<8x1xf32>
      %181 = arith.divf %179, %180 : vector<8x1xf32>
      %182 = vector.broadcast %174 : vector<8x1xf32> to vector<8x32xf32>
      %183 = arith.subf %168, %182 : vector<8x32xf32>
      %cst_89 = arith.constant 9.99999996E-13 : f32
      %184 = vector.broadcast %cst_89 : f32 to vector<8x1xf32>
      %185 = arith.addf %181, %184 : vector<8x1xf32>
      %186 = math.rsqrt %185 : vector<8x1xf32>
      %187 = vector.broadcast %186 : vector<8x1xf32> to vector<8x32xf32>
      %188 = arith.mulf %183, %187 : vector<8x32xf32>
      %189 = vector.broadcast %169 : vector<1x32xf32> to vector<8x32xf32>
      %190 = arith.mulf %188, %189 : vector<8x32xf32>
      %191 = vector.broadcast %170 : vector<1x32xf32> to vector<8x32xf32>
      %192 = arith.addf %190, %191 : vector<8x32xf32>
      %c0_90 = arith.constant 0 : index
      %c0_91 = arith.constant 0 : index
      %193 = vector.load %arg21[%c0_90, %c0_91] : memref<8x32xf32, #tpu.memory_space<vmem>>, vector<8x32xf32>
      tpu.vector_store %arg21[%c0_90, %c0_91], %192 {strides = array<i32>} : memref<8x32xf32, #tpu.memory_space<vmem>>, vector<8x32xf32>,
      %194 = arith.truncf %192 : vector<8x32xf32> to vector<8x32xbf16>
      %c0_92 = arith.constant 0 : index
      %c0_93 = arith.constant 0 : index
      %195 = vector.load %arg22[%c0_92, %c0_93] : memref<8x32xbf16, #tpu.memory_space<vmem>>, vector<8x32xbf16>
      tpu.vector_store %arg22[%c0_92, %c0_93], %194 {strides = array<i32>} : memref<8x32xbf16, #tpu.memory_space<vmem>>, vector<8x32xbf16>,
      %cst_94 = arith.constant 0.000000e+00 : f32
      %196 = vector.broadcast %cst_94 : f32 to vector<8x32xf32>
      %c0_95 = arith.constant 0 : index
      %c0_96 = arith.constant 0 : index
      %197 = vector.load %arg20[%c0_95, %c0_96] : memref<8x32xf32, #tpu.memory_space<vmem>>, vector<8x32xf32>
      tpu.vector_store %arg20[%c0_95, %c0_96], %196 {strides = array<i32>} : memref<8x32xf32, #tpu.memory_space<vmem>>, vector<8x32xf32>,
    } else {
    }
    %c0 = arith.constant 0 : index
    %c0_1 = arith.constant 0 : index
    %3 = vector.load %arg22[%c0, %c0_1] : memref<8x32xbf16, #tpu.memory_space<vmem>>, vector<8x32xbf16>
    %c0_2 = arith.constant 0 : index
    %c0_3 = arith.constant 0 : index
    %4 = vector.load %arg13[%c0_2, %c0_3] : memref<32x128xbf16, #tpu.memory_space<vmem>>, vector<32x128xbf16>
    %cst = arith.constant dense<0.000000e+00> : vector<8x128xf32>
    %5 = tpu.matmul %3, %4, %cst {dimension_numbers = #tpu.dot_dimension_numbers<[1], [0], [0], [1], [0, 0, 1, 1], [], []>} : vector<8x32xbf16>, vector<32x128xbf16>, vector<8x128xf32> -> vector<8x128xf32>
    %c0_4 = arith.constant 0 : index
    %c0_5 = arith.constant 0 : index
    %6 = vector.load %arg14[%c0_4, %c0_5] : memref<1x128xf32, #tpu.memory_space<vmem>>, vector<1x128xf32>
    %7 = vector.broadcast %6 : vector<1x128xf32> to vector<8x128xf32>
    %8 = arith.addf %5, %7 : vector<8x128xf32>
    %cst_6 = arith.constant 5.000000e-01 : f32
    %9 = vector.broadcast %cst_6 : f32 to vector<8x128xf32>
    %10 = arith.mulf %9, %8 : vector<8x128xf32>
    %cst_7 = arith.constant 0.707106769 : f32
    %11 = vector.broadcast %cst_7 : f32 to vector<8x128xf32>
    %12 = arith.mulf %8, %11 : vector<8x128xf32>
    %cst_8 = arith.constant 0.000000e+00 : f32
    %13 = vector.broadcast %cst_8 : f32 to vector<8x128xf32>
    %14 = arith.cmpf oge, %12, %13 : vector<8x128xf32>
    %cst_9 = arith.constant 1.000000e+00 : f32
    %cst_10 = arith.constant -1.000000e+00 : f32
    %15 = vector.broadcast %cst_9 : f32 to vector<8x128xf32>
    %16 = vector.broadcast %cst_10 : f32 to vector<8x128xf32>
    %17 = arith.select %14, %15, %16 : vector<8x128xi1>, vector<8x128xf32>
    %18 = math.absf %12 : vector<8x128xf32>
    %cst_11 = arith.constant 0.327591091 : f32
    %19 = vector.broadcast %cst_11 : f32 to vector<8x128xf32>
    %20 = arith.mulf %19, %18 : vector<8x128xf32>
    %cst_12 = arith.constant 1.000000e+00 : f32
    %21 = vector.broadcast %cst_12 : f32 to vector<8x128xf32>
    %22 = arith.addf %21, %20 : vector<8x128xf32>
    %23 = tpu.reciprocal %22 {approx = true} : vector<8x128xf32> -> vector<8x128xf32>
    %cst_13 = arith.constant 1.06140542 : f32
    %24 = vector.broadcast %cst_13 : f32 to vector<8x128xf32>
    %25 = arith.mulf %24, %23 : vector<8x128xf32>
    %cst_14 = arith.constant -1.45315206 : f32
    %26 = vector.broadcast %cst_14 : f32 to vector<8x128xf32>
    %27 = arith.addf %25, %26 : vector<8x128xf32>
    %28 = arith.mulf %27, %23 : vector<8x128xf32>
    %cst_15 = arith.constant 1.42141378 : f32
    %29 = vector.broadcast %cst_15 : f32 to vector<8x128xf32>
    %30 = arith.addf %28, %29 : vector<8x128xf32>
    %31 = arith.mulf %30, %23 : vector<8x128xf32>
    %cst_16 = arith.constant -0.284496725 : f32
    %32 = vector.broadcast %cst_16 : f32 to vector<8x128xf32>
    %33 = arith.addf %31, %32 : vector<8x128xf32>
    %34 = arith.mulf %33, %23 : vector<8x128xf32>
    %cst_17 = arith.constant 0.254829586 : f32
    %35 = vector.broadcast %cst_17 : f32 to vector<8x128xf32>
    %36 = arith.addf %34, %35 : vector<8x128xf32>
    %37 = arith.mulf %36, %23 : vector<8x128xf32>
    %cst_18 = arith.constant 0.000000e+00 : f32
    %38 = vector.broadcast %cst_18 : f32 to vector<8x128xf32>
    %39 = arith.subf %38, %18 : vector<8x128xf32>
    %40 = arith.mulf %39, %18 : vector<8x128xf32>
    %41 = math.exp %40 : vector<8x128xf32>
    %42 = arith.mulf %37, %41 : vector<8x128xf32>
    %cst_19 = arith.constant 1.000000e+00 : f32
    %43 = vector.broadcast %cst_19 : f32 to vector<8x128xf32>
    %44 = arith.subf %43, %42 : vector<8x128xf32>
    %45 = arith.mulf %17, %44 : vector<8x128xf32>
    %cst_20 = arith.constant 1.000000e+00 : f32
    %46 = vector.broadcast %cst_20 : f32 to vector<8x128xf32>
    %47 = arith.addf %46, %45 : vector<8x128xf32>
    %48 = arith.mulf %10, %47 : vector<8x128xf32>
    %c0_21 = arith.constant 0 : index
    %c0_22 = arith.constant 0 : index
    %49 = vector.load %arg20[%c0_21, %c0_22] : memref<8x32xf32, #tpu.memory_space<vmem>>, vector<8x32xf32>
    %50 = arith.truncf %48 : vector<8x128xf32> to vector<8x128xbf16>
    %c0_23 = arith.constant 0 : index
    %c0_24 = arith.constant 0 : index
    %51 = vector.load %arg15[%c0_23, %c0_24] : memref<128x32xbf16, #tpu.memory_space<vmem>>, vector<128x32xbf16>
    %cst_25 = arith.constant dense<0.000000e+00> : vector<8x32xf32>
    %52 = tpu.matmul %50, %51, %cst_25 {dimension_numbers = #tpu.dot_dimension_numbers<[1], [0], [0], [1], [0, 0, 1, 1], [], []>} : vector<8x128xbf16>, vector<128x32xbf16>, vector<8x32xf32> -> vector<8x32xf32>
    %53 = arith.addf %49, %52 : vector<8x32xf32>
    %c0_26 = arith.constant 0 : index
    %c0_27 = arith.constant 0 : index
    %54 = vector.load %arg20[%c0_26, %c0_27] : memref<8x32xf32, #tpu.memory_space<vmem>>, vector<8x32xf32>
    tpu.vector_store %arg20[%c0_26, %c0_27], %53 {strides = array<i32>} : memref<8x32xf32, #tpu.memory_space<vmem>>, vector<8x32xf32>,
    %c1_i32 = arith.constant 1 : i32
    %55 = arith.cmpi eq, %arg2, %c1_i32 : i32
    %56 = arith.extui %55 : i1 to i32
    %c0_i32_28 = arith.constant 0 : i32
    %57 = arith.cmpi ne, %56, %c0_i32_28 : i32
    scf.if %57 {
      %c0_29 = arith.constant 0 : index
      %c0_30 = arith.constant 0 : index
      %58 = vector.load %arg20[%c0_29, %c0_30] : memref<8x32xf32, #tpu.memory_space<vmem>>, vector<8x32xf32>
      %c0_31 = arith.constant 0 : index
      %c0_32 = arith.constant 0 : index
      %59 = vector.load %arg16[%c0_31, %c0_32] : memref<1x32xf32, #tpu.memory_space<vmem>>, vector<1x32xf32>
      %60 = vector.broadcast %59 : vector<1x32xf32> to vector<8x32xf32>
      %61 = arith.addf %58, %60 : vector<8x32xf32>
      %c0_33 = arith.constant 0 : index
      %c0_34 = arith.constant 0 : index
      %62 = vector.load %arg21[%c0_33, %c0_34] : memref<8x32xf32, #tpu.memory_space<vmem>>, vector<8x32xf32>
      %63 = arith.addf %61, %62 : vector<8x32xf32>
      %c0_35 = arith.constant 0 : index
      %c0_36 = arith.constant 0 : index
      %64 = vector.load %arg17[%c0_35, %c0_36] : memref<1x32xf32, #tpu.memory_space<vmem>>, vector<1x32xf32>
      %c0_37 = arith.constant 0 : index
      %c0_38 = arith.constant 0 : index
      %65 = vector.load %arg18[%c0_37, %c0_38] : memref<1x32xf32, #tpu.memory_space<vmem>>, vector<1x32xf32>
      %cst_39 = arith.constant dense<0.000000e+00> : vector<8xf32>
      %66 = vector.multi_reduction <add>, %63, %cst_39 [1] : vector<8x32xf32> to vector<8xf32>
      %67 = vector.shape_cast %66 : vector<8xf32> to vector<8x1xf32>
      %cst_40 = arith.constant 3.200000e+01 : f32
      %68 = vector.broadcast %cst_40 : f32 to vector<8x1xf32>
      %69 = arith.divf %67, %68 : vector<8x1xf32>
      %70 = vector.broadcast %69 : vector<8x1xf32> to vector<8x32xf32>
      %71 = arith.subf %63, %70 : vector<8x32xf32>
      %72 = arith.mulf %71, %71 : vector<8x32xf32>
      %cst_41 = arith.constant dense<0.000000e+00> : vector<8xf32>
      %73 = vector.multi_reduction <add>, %72, %cst_41 [1] : vector<8x32xf32> to vector<8xf32>
      %74 = vector.shape_cast %73 : vector<8xf32> to vector<8x1xf32>
      %cst_42 = arith.constant 3.200000e+01 : f32
      %75 = vector.broadcast %cst_42 : f32 to vector<8x1xf32>
      %76 = arith.divf %74, %75 : vector<8x1xf32>
      %77 = vector.broadcast %69 : vector<8x1xf32> to vector<8x32xf32>
      %78 = arith.subf %63, %77 : vector<8x32xf32>
      %cst_43 = arith.constant 9.99999996E-13 : f32
      %79 = vector.broadcast %cst_43 : f32 to vector<8x1xf32>
      %80 = arith.addf %76, %79 : vector<8x1xf32>
      %81 = math.rsqrt %80 : vector<8x1xf32>
      %82 = vector.broadcast %81 : vector<8x1xf32> to vector<8x32xf32>
      %83 = arith.mulf %78, %82 : vector<8x32xf32>
      %84 = vector.broadcast %64 : vector<1x32xf32> to vector<8x32xf32>
      %85 = arith.mulf %83, %84 : vector<8x32xf32>
      %86 = vector.broadcast %65 : vector<1x32xf32> to vector<8x32xf32>
      %87 = arith.addf %85, %86 : vector<8x32xf32>
      %c0_44 = arith.constant 0 : index
      %c0_45 = arith.constant 0 : index
      %c0_46 = arith.constant 0 : index
      %88 = vector.load %arg19[%c0_44, %c0_45, %c0_46] : memref<1x8x32xf32, #tpu.memory_space<vmem>>, vector<1x8x32xf32>
      %89 = vector.shape_cast %88 : vector<1x8x32xf32> to vector<8x32xf32>
      %90 = vector.shape_cast %87 : vector<8x32xf32> to vector<1x8x32xf32>
      tpu.vector_store %arg19[%c0_44, %c0_45, %c0_46], %90 {strides = array<i32>} : memref<1x8x32xf32, #tpu.memory_space<vmem>>, vector<1x8x32xf32>,
    } else {
    }
    return
  }
  func.func @transform_0(%arg0: i32, %arg1: i32, %arg2: i32) -> (i32, i32, i32) {
    %c0_i32 = arith.constant 0 : i32
    %c0_i32_0 = arith.constant 0 : i32
    return %arg0, %arg1, %c0_i32 : i32, i32, i32
  }
  func.func @transform_1(%arg0: i32, %arg1: i32, %arg2: i32) -> (i32, i32, i32, i32) {
    %c0_i32 = arith.constant 0 : i32
    %c0_i32_0 = arith.constant 0 : i32
    %c0_i32_1 = arith.constant 0 : i32
    %c0_i32_2 = arith.constant 0 : i32
    return %arg0, %c0_i32, %c0_i32_0, %c0_i32_1 : i32, i32, i32, i32
  }
  func.func @transform_2(%arg0: i32, %arg1: i32, %arg2: i32) -> (i32, i32, i32, i32) {
    %c0_i32 = arith.constant 0 : i32
    %c0_i32_0 = arith.constant 0 : i32
    %c0_i32_1 = arith.constant 0 : i32
    %c0_i32_2 = arith.constant 0 : i32
    return %arg0, %c0_i32, %c0_i32_0, %c0_i32_1 : i32, i32, i32, i32
  }
  func.func @transform_3(%arg0: i32, %arg1: i32, %arg2: i32) -> (i32, i32, i32) {
    %c0_i32 = arith.constant 0 : i32
    %c0_i32_0 = arith.constant 0 : i32
    %c0_i32_1 = arith.constant 0 : i32
    return %arg0, %c0_i32, %c0_i32_0 : i32, i32, i32
  }
  func.func @transform_4(%arg0: i32, %arg1: i32, %arg2: i32) -> (i32, i32, i32) {
    %c0_i32 = arith.constant 0 : i32
    %c0_i32_0 = arith.constant 0 : i32
    %c0_i32_1 = arith.constant 0 : i32
    %c0_i32_2 = arith.constant 0 : i32
    return %c0_i32, %c0_i32_0, %c0_i32_1 : i32, i32, i32
  }
  func.func @transform_5(%arg0: i32, %arg1: i32, %arg2: i32) -> (i32, i32, i32) {
    %c0_i32 = arith.constant 0 : i32
    %c0_i32_0 = arith.constant 0 : i32
    %c0_i32_1 = arith.constant 0 : i32
    %c0_i32_2 = arith.constant 0 : i32
    return %c0_i32, %c0_i32_0, %c0_i32_1 : i32, i32, i32
  }
  func.func @transform_6(%arg0: i32, %arg1: i32, %arg2: i32) -> (i32, i32, i32) {
    %c0_i32 = arith.constant 0 : i32
    %c0_i32_0 = arith.constant 0 : i32
    %c0_i32_1 = arith.constant 0 : i32
    %c0_i32_2 = arith.constant 0 : i32
    return %c0_i32, %c0_i32_0, %c0_i32_1 : i32, i32, i32
  }
  func.func @transform_7(%arg0: i32, %arg1: i32, %arg2: i32) -> (i32, i32) {
    %c0_i32 = arith.constant 0 : i32
    %c0_i32_0 = arith.constant 0 : i32
    %c0_i32_1 = arith.constant 0 : i32
    return %c0_i32, %c0_i32_0 : i32, i32
  }
  func.func @transform_8(%arg0: i32, %arg1: i32, %arg2: i32) -> (i32, i32) {
    %c0_i32 = arith.constant 0 : i32
    %c0_i32_0 = arith.constant 0 : i32
    %c0_i32_1 = arith.constant 0 : i32
    return %c0_i32, %c0_i32_0 : i32, i32
  }
  func.func @transform_9(%arg0: i32, %arg1: i32, %arg2: i32) -> (i32, i32) {
    %c0_i32 = arith.constant 0 : i32
    %c0_i32_0 = arith.constant 0 : i32
    %c0_i32_1 = arith.constant 0 : i32
    return %c0_i32, %c0_i32_0 : i32, i32
  }
  func.func @transform_10(%arg0: i32, %arg1: i32, %arg2: i32) -> (i32, i32) {
    %c0_i32 = arith.constant 0 : i32
    %c0_i32_0 = arith.constant 0 : i32
    return %c0_i32, %arg2 : i32, i32
  }
  func.func @transform_11(%arg0: i32, %arg1: i32, %arg2: i32) -> (i32, i32) {
    %c0_i32 = arith.constant 0 : i32
    %c0_i32_0 = arith.constant 0 : i32
    return %c0_i32, %arg2 : i32, i32
  }
  func.func @transform_12(%arg0: i32, %arg1: i32, %arg2: i32) -> (i32, i32) {
    %c0_i32 = arith.constant 0 : i32
    %c0_i32_0 = arith.constant 0 : i32
    return %arg2, %c0_i32 : i32, i32
  }
  func.func @transform_13(%arg0: i32, %arg1: i32, %arg2: i32) -> (i32, i32) {
    %c0_i32 = arith.constant 0 : i32
    %c0_i32_0 = arith.constant 0 : i32
    %c0_i32_1 = arith.constant 0 : i32
    return %c0_i32, %c0_i32_0 : i32, i32
  }
  func.func @transform_14(%arg0: i32, %arg1: i32, %arg2: i32) -> (i32, i32) {
    %c0_i32 = arith.constant 0 : i32
    %c0_i32_0 = arith.constant 0 : i32
    %c0_i32_1 = arith.constant 0 : i32
    return %c0_i32, %c0_i32_0 : i32, i32
  }
  func.func @transform_15(%arg0: i32, %arg1: i32, %arg2: i32) -> (i32, i32) {
    %c0_i32 = arith.constant 0 : i32
    %c0_i32_0 = arith.constant 0 : i32
    %c0_i32_1 = arith.constant 0 : i32
    return %c0_i32, %c0_i32_0 : i32, i32
  }
  func.func @transform_16(%arg0: i32, %arg1: i32, %arg2: i32) -> (i32, i32, i32) {
    %c0_i32 = arith.constant 0 : i32
    %c0_i32_0 = arith.constant 0 : i32
    return %arg0, %arg1, %c0_i32 : i32, i32, i32
  }
}

</mosaic_0001>

<bundles_post_ra>
// kernel: tpu_custom_call.1
= control target key start
LH: loop header
LB: loop body
LE: loop exit
PB: predicated region body
PF: predicated region fallthrough
CT: control target
= control target key end

     0   :  { %s2292_s0 = inlined_call_operand.vmem [shape: f32[2,16,32], index: 0, kind: input, shape index: {}]   ;;  %s2293_s1 = inlined_call_operand.vmem [shape: bf16[2,1,16,32], index: 1, kind: input, shape index: {}]   ;;  %s2294_s2 = inlined_call_operand.vmem [shape: bf16[2,1,16,32], index: 2, kind: input, shape index: {}]   ;;  %s2295_s3 = inlined_call_operand.vmem [shape: f32[2,1,16], index: 3, kind: input, shape index: {}]   ;;  %s2296_s4 = inlined_call_operand.vmem [shape: bf16[1,32,32], index: 4, kind: input, shape index: {}]   ;;  %s2297_s5 = inlined_call_operand.vmem [shape: f32[1,1,32], index: 5, kind: input, shape index: {}]   ;;  %s2298_s6 = inlined_call_operand.vmem [shape: bf16[1,32,32], index: 6, kind: input, shape index: {}]   ;;  %s2299_s7 = inlined_call_operand.vmem [shape: f32[1,32], index: 7, kind: input, shape index: {}]   ;;  %s2300_s8 = inlined_call_operand.vmem [shape: f32[1,32], index: 8, kind: input, shape index: {}]   ;;  %s2301_s9 = inlined_call_operand.vmem [shape: f32[1,32], index: 9, kind: input, shape index: {}]   ;;  %s2302_s10 = inlined_call_operand.vmem [shape: bf16[32,256], index: 10, kind: input, shape index: {}]   ;;  %s2303_s11 = inlined_call_operand.vmem [shape: f32[1,256], index: 11, kind: input, shape index: {}]   ;;  %s2304_s12 = inlined_call_operand.vmem [shape: bf16[256,32], index: 12, kind: input, shape index: {}]   ;;  %s2305_s13 = inlined_call_operand.vmem [shape: f32[1,32], index: 13, kind: input, shape index: {}]   ;;  %s2306_s14 = inlined_call_operand.vmem [shape: f32[1,32], index: 14, kind: input, shape index: {}]   ;;  %s2307_s15 = inlined_call_operand.vmem [shape: f32[1,32], index: 15, kind: input, shape index: {}]   ;;  %s2308_s16 = inlined_call_operand.hbm [shape: f32[2,16,32], index: 16, kind: output, shape index: {}]  }
   0x1   :  { %2328 = sst [smem:[#allocation25_spill]] %s2292_s0 }
   0x2   :  { %2329 = sst [smem:[#allocation26_spill]] %s2297_s5 }
   0x3   :  { %2330 = sst [smem:[#allocation27_spill]] %s2298_s6 }
   0x4   :  { %2331 = sst [smem:[#allocation28_spill]] %s2299_s7 }
   0x5   :  { %2332 = sst [smem:[#allocation29_spill]] %s2300_s8 }
   0x6   :  { %2333 = sst [smem:[#allocation30_spill]] %s2301_s9 }
   0x7   :  { %2334 = sst [smem:[#allocation31_spill]] %s2302_s10 }
   0x8   :  { %2335 = sst [smem:[#allocation32_spill]] %s2305_s13 }
   0x9   :  { %2336 = sst [smem:[#allocation33_spill]] %s2306_s14 }
   0xa   :  { %2337 = sst [smem:[#allocation34_spill]] %s2307_s15 }
   0xb   :  { %2338 = sst [smem:[#allocation35_spill]] %s2308_s16 }
   0xc   :  { %21 = vsyncpa [#allocation7], 0 }
   0xd   :  { %23 = vsyncpa [#allocation7 + $0x1], 0  ;;  %s1961_s21 = smov 0   ;;  %s1963_s22 = smov 0  }
   0xe   :  { %s1965_s23 = smov 0   ;;  %s1967_s24 = smov 0  }
   0xf   :  { %s1969_s25 = smov 0   ;;  %s1971_s26 = smov 0  }
  0x10   :  { %s1973_s27 = smov 0   ;;  %s1975_s28 = smov 0  }
  0x11   :  { %s1977_s29 = smov 0   ;;  %s1979_s30 = smov 0  }
  0x12   :  { %s1981_s0 = smov 0   ;;  %s1983_s17 = smov 0  }
  0x13 LB: > { %2339 = sst [smem:[#allocation9_spill]] %s1820_s21  ;;  %s1471_s18 = sadd.s32 4294967295, %s1864_s17   ;;  %s1864_s17 = sphi %s1983_s17, %s29_s17   ;;  %s1860_s0 = sphi %s1981_s0, %s2388_s0   ;;  %s1856_s30 = sphi %s1979_s30, %s2387_s30   ;;  %s1852_s29 = sphi %s1977_s29, %s2386_s29   ;;  %s1848_s28 = sphi %s1975_s28, %s2385_s28   ;;  %s1844_s27 = sphi %s1973_s27, %s2384_s27   ;;  %s1840_s26 = sphi %s1971_s26, %s2383_s26   ;;  %s1836_s25 = sphi %s1969_s25, %s2382_s25   ;;  %s1832_s24 = sphi %s1967_s24, %s2381_s24   ;;  %s1828_s23 = sphi %s1965_s23, %s2380_s23   ;;  %s1824_s22 = sphi %s1963_s22, %s2379_s22   ;;  %s1820_s21 = sphi %s1961_s21, %s2378_s21  }
  0x14   : > { %2340 = sst [smem:[#allocation10_spill]] %s1824_s22  ;;  %s1472_s19 = sadd.s32 4294967294, %s1864_s17  }
  0x15   : > { %2341 = sst [smem:[#allocation11_spill]] %s1828_s23  ;;  %s41_s20 = sadd.s32 1, %s1852_s29 }
  0x16   : > { %2342 = sst [smem:[#allocation12_spill]] %s1836_s25  ;;  %p42_p0 = scmp.ge.s32.totalorder %s41_s20, 2 }
  0x17   : > { %2343 = sst [smem:[#allocation13_spill]] %s1844_s27  ;;  %s44_s16 = sadd.s32 1, %s1856_s30 }
  0x18   : > { %2344 = sst [smem:[#allocation14_spill]] %s1852_s29  ;;  %s48_s15 = sadd.s32 1, %s1860_s0 }
  0x19   : > { %2345 = sst [smem:[#allocation15_spill]] %s1856_s30  ;;  %p294_p1 = scmp.ne.s32.totalorder %s1836_s25, %s1832_s24 }
  0x1a   : > { %2346 = sst [smem:[#allocation16_spill]] %s1860_s0  ;;  %s2390_s20 = smov (%p42_p0, %s41_s20), 0 }
  0x1b   : > { %2347 = sst [smem:[#allocation17_spill]] %s1864_s17  ;;  %s2392_s16 = smov (!%p42_p0, %s44_s16), %s1856_s30 }
  0x1c   : > { %2348 = sst [smem:[#allocation18_spill]] %s2390_s20  ;;  %s284_s14 = ssub.s32 %s1852_s29, %s2390_s20 }
  0x1d   : > { %p295_p2 = scmp.eq.s32.totalorder %s1864_s17, 0  ;;  %p46_p3 = scmp.ge.s32.totalorder %s2392_s16, 2 }
  0x1e   : > { %p285_p4 = scmp.eq.s32.totalorder %s284_s14, 0  ;;  %s287_s13 = sadd.s32 1, %s1836_s25 }
  0x1f   : > { %p2035_p5 = por %p295_p2, %p294_p1  ;;  %s2394_s16 = smov (%p46_p3, %s2392_s16), 0 }
  0x20   : > { %2350 = sst [smem:[#allocation19_spill]] %s2394_s16  ;;  %s2396_s15 = smov (!%p46_p3, %s48_s15), %s1860_s0 }
  0x21   : > { %s2043_s8 = scalar_select %p285_p4, %s1836_s25, %s287_s13  }
  0x22   : > { %p50_p6 = scmp.ge.s32.totalorder %s2396_s15, 2  ;;  %s426_s7 = ssub.s32 %s1856_s30, %s2394_s16 }
  0x23   : > { %2351 = sst [smem:[#allocation20_spill]] %s2043_s8  ;;  %p440_p7 = scmp.ne.s32.totalorder %s1828_s23, %s1824_s22 }
  0x24   : > { %p441_p8 = scmp.eq.s32.totalorder %s1471_s18, 7  ;;  %s2398_s15 = smov (%p50_p6, %s2396_s15), 0 }
  0x25   : > { %2352 = sst [smem:[#allocation21_spill]] %s2398_s15  ;;  %p446_p10 = scmp.ne.s32.totalorder %s1824_s22, %s1820_s21 }
  0x26   : > { %p2051_p9 = por %p441_p8, %p440_p7  ;;  %s425_s20 = ssub.s32 %s1860_s0, %s2398_s15 }
  0x27   : > { %p447_p11 = scmp.eq.s32.totalorder %s1472_s19, 7  ;;  %s427_s6 = sor.u32 %s426_s7, %s425_s20 }
  0x28   : > { %s2353_s14 = scalar_select %p2051_p9, 1, 0 }
  0x29   : > { %s430_s5 = sadd.s32 1, %s1828_s23  ;;  %p428_p12 = scmp.eq.s32.totalorder %s427_s6, 0 }
  0x2a   : > { %2354 = sst [smem:[#allocation22_spill]] %s2353_s14  ;;  %p2060_p13 = por %p447_p11, %p446_p10 }
  0x2b   : > { %s2065_s16 = scalar_select %p428_p12, %s1828_s23, %s430_s5  }
  0x2c   : > { %s2355_s13 = scalar_select %p2060_p13, 1, 0 }
  0x2d   : > { %2357 = sst [smem:[#allocation24_spill]] %s2065_s16  ;;  %p1474_p0 = scmp.ge.s32.totalorder %s1864_s17, 8 }
  0x2e   : > { %2356 = sst [smem:[#allocation23_spill]] %s2355_s13 }
  0x2f   : > { %490 = sbr.rel (%p1474_p0) target bundleno = 66 (0x42), region = 52 }
  0x34   : > { %526 = sbr.rel (!%p2035_p5) target bundleno = 66 (0x42), region = 72  ;;  %s528_s18 = sand.u32 (%p2035_p5), 1, %s1836_s25  }
  0x35   : > { %s1476_s15 = sshll.u32 (%p2035_p5), %s1852_s29, 2  ;;  %s1475_s19 = sshll.u32 (%p2035_p5), %s528_s18, 4 }
  0x36   : > { %s2358_s10 = sld [smem:[#allocation31_spill]] (%p2035_p5)  ;;  %s530_s0 = scalar_lea.vmem (%p2035_p5), [#allocation5], %s1475_s19 }
  0x3c   : > { %s532_s6 = scalar_lea.vmem %s2358_s10, %s1476_s15 }
  0x3d   : > { %v549_v0 = vld [vmem:[%s532_s6] sm:$0xf]  ;;  %v551_v1 = vld [vmem:[%s532_s6 + $0x8] sm:$0xf]  ;;  %v553_v2 = vld [vmem:[%s532_s6 + $0x10] sm:$0xf] }
  0x3e   : > { %550 = vst [vmem:[%s530_s0] sm:$0xf] %v549_v0  ;;  %v555_v3 = vld [vmem:[%s532_s6 + $0x18] sm:$0xf] }
  0x3f   : > { %552 = vst [vmem:[%s530_s0 + $0x4] sm:$0xf] %v551_v1 }
  0x40   : > { %554 = vst [vmem:[%s530_s0 + $0x8] sm:$0xf] %v553_v2 }
  0x41   : > { %556 = vst [vmem:[%s530_s0 + $0xc] sm:$0xf] %v555_v3 }
  0x42 PF: > { %p1477_p1 = scmp.ge.s32.totalorder %s1864_s17, 1  ;;  %p602_p2 = scmp.lt.s32.totalorder %s1864_s17, 9 }
  0x44   : > { %p603_p3 = pnand %p1477_p1, %p602_p2 }
  0x45   : > { %s609_s5 = sand.u32 (!%p603_p3), 1, %s1832_s24   ;;  %s2315_s9 = sand.u32 (!%p603_p3), 1, %s1824_s22  }
  0x46   : > { %606 = sbr.rel (%p603_p3) target bundleno = 2057 (0x809), region = 121  ;;  %s2079_s15 = sshll.u32 (!%p603_p3), %s609_s5, 4 }
  0x47   : > { %s2083_s0 = sshll.u32 (!%p603_p3), %s2315_s9, 3  ;;  %p687_p4 = scmp.lt.s32.totalorder (!%p603_p3), %s1848_s28, 1 }
  0x48   : > { %p689_p5 = scmp.lt.s32.totalorder (!%p603_p3), %s1844_s27, 1  ;;  %p708_p6 = scmp.lt.s32.totalorder (!%p603_p3), %s1840_s26, 1 }
  0x49   : > { %s1486_s18 = sshll.u32 (!%p603_p3), %s1840_s26, 4  ;;  %s2359_s13 = sld [smem:[#allocation25_spill]] (!%p603_p3) }
  0x4a   : > { %p712_p7 = scmp.lt.s32.totalorder (!%p603_p3), %s1486_s18, 31  ;;  %s611_s16 = scalar_lea.vmem (!%p603_p3), [#allocation5], %s2079_s15 }
  0x4b   : > { %s2090_s19 = scalar_select %p687_p4, %s1848_s28, 1 }
  0x4c   : > { %s690_s7 = scalar_select %p689_p5, %s1844_s27, 1 }
  0x4d   : > { %s1480_s24 = sshll.u32 %s2090_s19, 1  ;;  %s1570_s20 = sshll.u32 %s2090_s19, 3 }
  0x4e   : > { %s692_s6 = sadd.s32 %s1480_s24, %s690_s7  ;;  %s699_s9 = scalar_lea.vmem %s2293_s1, %s1570_s20 }
  0x4f   : > { %s1481_s30 = sshll.u32 %s692_s6, 3  ;;  %s2101_s25 = scalar_lea.vmem %s2294_s2, %s1570_s20 }
  0x50   : > { %s694_s21 = scalar_lea.vmem %s2359_s13, %s1481_s30  ;;  %s707_s22 = scalar_lea.vmem %s2295_s3, %s2090_s19 }
  0x51   : > { %s2111_s27 = scalar_select %p708_p6, %s1840_s26, 1 }
  0x52   : > { %s2400_s18 = smov (!%p712_p7, %s1486_s18), 31  ;;  %s686_s23 = scalar_lea.vmem [#allocation6], %s2083_s0 }
  0x53   : > { %s710_s24 = scalar_lea.vmem %s2303_s11, %s2111_s27  ;;  %s1487_s8 = sshll.u32 %s2400_s18, 2 }
  0x54   : > { %s2120_s6 = scalar_lea.vmem %s2304_s12, %s1487_s8  ;;  %p1488_p8 = scmp.ne.s32.totalorder %s1840_s26, 0 }
  0x55   : > { %s1866_s18 = smov (!%p1488_p8), 112   ;;  %s1867_s5 = smov (!%p1488_p8), 104  }
  0x56   : > { %721 = sbr.rel (%p1488_p8) target bundleno = 1445 (0x5a5), region = 129  ;;  %s2360_s8 = sld [smem:[#allocation26_spill]] (!%p1488_p8) }
  0x57   : > { %s1871_s19 = smov (!%p1488_p8), 24   ;;  %s2361_s17 = sld [smem:[#allocation27_spill]] (!%p1488_p8) }
  0x58   : > { %s2363_s10 = sld [smem:[#allocation28_spill]] (!%p1488_p8) }
  0x5b   : > { %v1573_v4 = vld [vmem:[%s2296_s4 + $0x8] sm:$0xff]  ;;  %v1572_v5 = vld [vmem:[%s2296_s4] sm:$0xff]  ;;  %vm728_vm0 = vcmask 261120   ;;  %vm777_vm1 = vcmask 64512   ;;  %vm797_vm2 = vcmask 130048   ;;  %vm1011_vm3 = vcmask 195584  }
  0x5c   : > { %v2131_v6 = vld [vmem:[%s694_s21] sm:$0xff]  ;;  %759 = vmatpush.bf16.msra.mxu0 %v1573_v4  ;;  %s1868_s21 = smov 120   ;;  %vm1097_vm8 = vcmask 257024  }
  0x5d   : > { %v723_v7 = vpack.c.bf16 %v2131_v6, %v2131_v6  ;;  %v1574_v8 = vld [vmem:[%s699_s9] sm:$0xff]  ;;  %s2362_s14 = smov %s2361_s17  ;;  %s2364_s9 = sld [smem:[#allocation29_spill]] }
  0x5e   : > { %v782_v9 = vsel %vm777_vm1, %v1574_v8, 0  ;;  %891 = vrot.lane.b32.xlu2 %v1574_v8, %s1866_s18  ;;  %945 = vrot.lane.b32.xlu1 %v1574_v8, %s1867_s5  ;;  %v1701_v10 = vld [vmem:[%s2360_s8] ss:$0 sm:$0xff] }
  0x5f   : > { %791 = vmatpush.bf16.xpose.msra.mxu1 %v782_v9  ;;  %837 = vrot.lane.b32.xlu0 %v1574_v8, %s1868_s21  ;;  %v1702_v26 = vld [vmem:[%s707_s22] ss:$0 sm:$0xff]  ;;  %s1869_s22 = smov 8  }
  0x60   : > { %760 = vmatpush.bf16.msra.mxu0 %v1572_v5  ;;  %v1575_v49 = vld [vmem:[%s2101_s25] sm:$0xff]  ;;  %s1870_s25 = smov 16  }
  0x61   : > { %826 = vmatpush.bf16.msra.mxu2 %v1575_v49 }
  0x63   : > { %1497 = vmatmul.msk.bf16.vlgmr.msra.gmra.mxu0 %vm728_vm0, %v723_v7 }
  0xb8   : > { %v892_v18 = vpop.permute.xlu2 %891 }
  0xb9   : > { %v897_v19 = vsel %vm777_vm1, %v892_v18, 0 }
  0xba   : > { %906 = vmatpush.bf16.xpose.msrb.mxu0 %v897_v19 }
  0xd0   : > { %v946_v22 = vpop.permute.xlu1 %945 }
  0xd1   : > { %v838_v20 = vpop.permute.xlu0 %837  ;;  %v951_v24 = vsel %vm777_vm1, %v946_v22, 0 }
  0xd2   : > { %v843_v21 = vsel %vm777_vm1, %v838_v20, 0 }
  0xd3   : > { %852 = vmatpush.bf16.xpose.msra.mxu3 %v843_v21 }
  0xdb   : > { %960 = vmatpush.bf16.xpose.msrb.mxu3 %v951_v24 }
  0xe0   : > { %v762_v11 = vpop.f32.mrf.mxu0 }
  0xe1   : > { %v763_v12 = vadd.f32 %v1701_v10, %v762_v11 }
  0xe3   : > { %v766_v13 = vmul.f32 0.35355338, %v763_v12 }
  0xe5   : > { %v767_v14 = vpack.c.bf16 %v766_v13, %v766_v13 }
  0xe7   : > { %v833_v15 = vunpack.c.l.b16 %v767_v14  ;;  %1502 = vmatmul.msk.bf16.vlgmr.msra.gmra.mxu1 %vm777_vm1, %v767_v14 }
  0xe8   : > { %v764_v16 = vpop.f32.mrf.mxu0 }
  0xe9   : > { %v834_v17 = vpack.c.b16 %v833_v15, %v833_v15 }
  0xeb   : > { %889 = vrot.lane.b32.xlu2 %v834_v17, %s1866_s18  ;;  %943 = vrot.lane.b32.xlu1 %v834_v17, %s1867_s5 }
  0xec   : > { %835 = vrot.lane.b32.xlu0 %v834_v17, %s1868_s21 }
 0x145   : > { %v890_v23 = vpop.permute.xlu2 %889 }
 0x146   : > { %1510 = vmatmul.msk.bf16.vlgmr.msrb.gmra.mxu0 %vm777_vm1, %v890_v23 }
 0x15d   : > { %v944_v31 = vpop.permute.xlu1 %943 }
 0x15e   : > { %v836_v25 = vpop.permute.xlu0 %835 }
 0x15f   : > { %1508 = vmatmul.msk.bf16.vlgmr.msra.gmra.mxu3 %vm777_vm1, %v836_v25 }
 0x164   : > { %v793_v27 = vpop.f32.mrf.mxu1 }
 0x165   : > { %v794_v28 = vadd.f32 %v1702_v26, %v793_v27 }
 0x167   : > { %v798_v29 = vsel %vm797_vm2, %v794_v28, -inf }
 0x168   : > { %799 = vmax.xlane.f32.xlu0 %v798_v29  ;;  %v1577_v29 = vld [vmem:[%s2361_s17 + $0x8] sm:$0xff] }
 0x169   : > { %1040 = vmatpush.bf16.msra.mxu0 %v1577_v29 }
 0x16c   : > { %v795_v30 = vpop.f32.mrf.mxu1 }
 0x16d   : > { %v1576_v30 = vld [vmem:[%s2362_s14] sm:$0xff] }
 0x16e   : > { %1041 = vmatpush.bf16.msra.mxu0 %v1576_v30 }
 0x16f   : > { %1512 = vmatmul.msk.bf16.vlgmr.msrb.gmra.mxu3 %vm777_vm1, %v944_v31  ;;  %v1872_v31 = vmov 0.0  }
 0x170   : > { %729 = vst.msk [vmem:[#allocation2] sm:$0xff] %vm728_vm0, %v1872_v31 }
 0x1c3   : > { %v908_v32 = vpop.f32.mrf.mxu0 }
 0x1c4   : > { %v909_v46 = vadd.f32 %v1702_v26, %v908_v32 }
 0x1c6   : > { %v912_v48 = vsel %vm797_vm2, %v909_v46, -inf }
 0x1cb   : > { %v910_v33 = vpop.f32.mrf.mxu0 }
 0x1db   : > { %v800_v34 = vpop.xlane.xlu0 %799 }
 0x1dc   : > { %v801_v35 = vsub.f32 %v794_v28, %v800_v34 }
 0x1de   : > { %v802_v36 = vmul.f32 1.442695, %v801_v35 }
 0x1e0   : > { %1706 = vpow2.f32 %v802_v36 }
 0x1e2   : > { %v854_v37 = vpop.f32.mrf.mxu3 }
 0x1e3   : > { %v855_v38 = vadd.f32 %v1702_v26, %v854_v37 }
 0x1e5   : > { %v858_v39 = vsel %vm797_vm2, %v855_v38, -inf }
 0x1e6   : > { %v1707_v40 = vpop.eup %1706  ;;  %859 = vmax.xlane.f32.xlu1 %v858_v39  ;;  %v1013_v39 = vld [vmem:[#allocation2] sm:$0xff] }
 0x1e7   : > { %v804_v41 = vsel %vm797_vm2, %v1707_v40, 0.0 }
 0x1e8   : > { %805 = vadd.xlane.f32.xlu0 %v804_v41 }
 0x1ea   : > { %v856_v42 = vpop.f32.mrf.mxu3 }
 0x1eb   : > { %v1703_v42 = vld [vmem:[%s2363_s10] ss:$0 sm:$0xff] }
 0x1f2   : > { %v962_v43 = vpop.f32.mrf.mxu3 }
 0x1f3   : > { %v963_v44 = vadd.f32 %v1702_v26, %v962_v43 }
 0x1f5   : > { %v966_v45 = vsel %vm797_vm2, %v963_v44, -inf }
 0x1f6   : > { %967 = vmax.xlane.f32.xlu2 %v966_v45 }
 0x1fa   : > { %v964_v47 = vpop.f32.mrf.mxu3 }
 0x1fe   : > { %913 = vmax.xlane.f32.xlu2 %v912_v48  ;;  %v1873_v48 = vmov 32.0  }
 0x216   : > { %870 = vrot.lane.b32.xlu2 %v1575_v49, %s1868_s21 }
 0x259   : > { %v860_v57 = vpop.xlane.xlu1 %859 }
 0x25a   : > { %v861_v61 = vsub.f32 %v855_v38, %v860_v57 }
 0x25b   : > { %v806_v50 = vpop.xlane.xlu0 %805 }
 0x25c   : > { %1708 = vrcp.f32 %v806_v50  ;;  %v862_v0 = vmul.f32 1.442695, %v861_v61 }
 0x262   : > { %v1709_v51 = vpop.eup %1708 }
 0x263   : > { %v808_v52 = vmul.f32 %v1709_v51, %v1707_v40 }
 0x265   : > { %v809_v53 = vpack.c.bf16 %v808_v52, %v808_v52 }
 0x267   : > { %1507 = vmatmul.msk.bf16.vlgmr.msra.gmra.mxu2 %vm797_vm2, %v809_v53 }
 0x269   : > { %v968_v54 = vpop.xlane.xlu2 %967 }
 0x26a   : > { %v969_v55 = vsub.f32 %v963_v44, %v968_v54 }
 0x26c   : > { %v970_v56 = vmul.f32 1.442695, %v969_v55 }
 0x26e   : > { %1710 = vpow2.f32 %v970_v56 }
 0x271   : > { %v914_v58 = vpop.xlane.xlu2 %913 }
 0x272   : > { %v915_v59 = vsub.f32 %v909_v46, %v914_v58 }
 0x274   : > { %v1711_v60 = vpop.eup %1710  ;;  %v916_v62 = vmul.f32 1.442695, %v915_v59 }
 0x275   : > { %v972_v63 = vsel %vm797_vm2, %v1711_v60, 0.0 }
 0x276   : > { %1712 = vpow2.f32 %v916_v62  ;;  %973 = vadd.xlane.f32.xlu0 %v972_v63 }
 0x277   : > { %1714 = vpow2.f32 %v862_v0 }
 0x279   : > { %v871_v5 = vpop.permute.xlu2 %870 }
 0x27a   : > { %883 = vmatpush.bf16.msrb.mxu2 %v871_v5 }
 0x27c   : > { %v1713_v1 = vpop.eup %1712 }
 0x27d   : > { %v918_v2 = vsel %vm797_vm2, %v1713_v1, 0.0  ;;  %v1715_v3 = vpop.eup %1714 }
 0x27e   : > { %919 = vadd.xlane.f32.xlu1 %v918_v2  ;;  %v864_v4 = vsel %vm797_vm2, %v1715_v3, 0.0 }
 0x286   : > { %865 = vadd.xlane.f32.xlu1 %v864_v4  ;;  %v1704_v4 = vld [vmem:[%s2364_s9] ss:$0 sm:$0xff] }
 0x28a   : > { %978 = vrot.lane.b32.xlu0 %v1575_v49, %s1867_s5 }
 0x29f   : > { %924 = vrot.lane.b32.xlu1 %v1575_v49, %s1866_s18 }
 0x2e9   : > { %v974_v10 = vpop.xlane.xlu0 %973 }
 0x2ea   : > { %v828_v7 = vpop.f32.mrf.mxu2 }
 0x2f1   : > { %v920_v8 = vpop.xlane.xlu1 %919 }
 0x2f2   : > { %v830_v9 = vpop.f32.mrf.mxu2 }
 0x2f9   : > { %v866_v11 = vpop.xlane.xlu1 %865 }
 0x2fa   : > { %1716 = vrcp.f32 %v866_v11 }
 0x2fb   : > { %1718 = vrcp.f32 %v974_v10 }
 0x2fc   : > { %v979_v12 = vpop.permute.xlu0 %978  ;;  %1720 = vrcp.f32 %v920_v8 }
 0x2fd   : > { %991 = vmatpush.bf16.msra.mxu2 %v979_v12  ;;  %1722 = vrcp.f32 %v1873_v48 }
 0x300   : > { %v1717_v13 = vpop.eup %1716 }
 0x301   : > { %v868_v14 = vmul.f32 %v1717_v13, %v1715_v3  ;;  %v1719_v16 = vpop.eup %1718 }
 0x302   : > { %v1721_v17 = vpop.eup %1720  ;;  %v976_v18 = vmul.f32 %v1719_v16, %v1711_v60 }
 0x303   : > { %v869_v15 = vpack.c.bf16 %v868_v14, %v868_v14  ;;  %v922_v19 = vmul.f32 %v1721_v17, %v1713_v1  ;;  %v1723_v49 = vpop.eup %1722 }
 0x304   : > { %v977_v21 = vpack.c.bf16 %v976_v18, %v976_v18  ;;  %v1062_v50 = vmul.f32 32.0, %v1723_v49  ;;  %vm1066_vm4 = vweird.f32 %v1723_v49 }
 0x305   : > { %1509 = vmatmul.msk.bf16.vlgmr.msrb.gmra.mxu2 %vm797_vm2, %v869_v15  ;;  %v923_v22 = vpack.c.bf16 %v922_v19, %v922_v19 }
 0x306   : > { %v1063_v51 = vsub.f32 1.0, %v1062_v50 }
 0x308   : > { %v1064_v52 = vmul.f32 %v1723_v49, %v1063_v51 }
 0x30a   : > { %v1065_v53 = vadd.f32 %v1723_v49, %v1064_v52 }
 0x30c   : > { %v1067_v54 = vsel %vm1066_vm4, %v1723_v49, %v1065_v53 }
 0x311   : > { %v925_v20 = vpop.permute.xlu1 %924 }
 0x312   : > { %937 = vmatpush.bf16.msrb.mxu1 %v925_v20 }
 0x315   : > { %1511 = vmatmul.msk.bf16.vlgmr.msrb.gmra.mxu1 %vm797_vm2, %v923_v22  ;;  %1513 = vmatmul.msk.bf16.vlgmr.msra.gmra.mxu2 %vm797_vm2, %v977_v21 }
 0x388   : > { %v885_v23 = vpop.f32.mrf.mxu2 }
 0x389   : > { %998 = vrot.lane.b32.xlu2 %v885_v23, %s1869_s22 }
 0x390   : > { %v887_v24 = vpop.f32.mrf.mxu2 }
 0x392   : > { %v939_v25 = vpop.f32.mrf.mxu1 }
 0x393   : > { %1002 = vrot.lane.b32.xlu0 %v939_v25, %s1870_s25  ;;  %s2365_s25 = sld [smem:[#allocation30_spill]] }
 0x398   : > { %v993_v26 = vpop.f32.mrf.mxu2 }
 0x399   : > { %1006 = vrot.lane.b32.xlu2 %v993_v26, %s1871_s19 }
 0x39a   : > { %v941_v27 = vpop.f32.mrf.mxu1 }
 0x3a0   : > { %v995_v28 = vpop.f32.mrf.mxu2 }
 0x3e3   : > { %v999_v32 = vpop.permute.xlu2 %998 }
 0x3e4   : > { %v1009_v33 = vsel %vm777_vm1, %v828_v7, %v999_v32  ;;  %v1705_v7 = vld [vmem:[%s2365_s25] ss:$0 sm:$0xff] }
 0x3f3   : > { %v1007_v35 = vpop.permute.xlu2 %1006 }
 0x405   : > { %v1003_v34 = vpop.permute.xlu0 %1002 }
 0x406   : > { %v1010_v36 = vsel %vm797_vm2, %v1009_v33, %v1003_v34 }
 0x407   : > { %v1012_v37 = vsel %vm1011_vm3, %v1010_v36, %v1007_v35 }
 0x408   : > { %v1014_v38 = vpack.c.bf16 %v1012_v37, %v1012_v37 }
 0x40a   : > { %1522 = vmatmul.msk.bf16.vlgmr.msra.gmra.mxu0 %vm728_vm0, %v1014_v38 }
 0x487   : > { %v1043_v40 = vpop.f32.mrf.mxu0 }
 0x488   : > { %v1047_v41 = vadd.f32 %v1043_v40, %v1013_v39 }
 0x48a   : > { %1048 = vst.msk [vmem:[#allocation2] sm:$0xff] %vm728_vm0, %v1047_v41 }
 0x48f   : > { %v1045_v43 = vpop.f32.mrf.mxu0 }
 0x491   : > { %v1049_v44 = vld [vmem:[#allocation2] sm:$0xff] }
 0x492   : > { %v1054_v45 = vadd.f32 %v1703_v42, %v1049_v44  ;;  %1099 = vst.msk [vmem:[#allocation2] sm:$0xff] %vm728_vm0, %v1872_v31 }
 0x494   : > { %v1055_v46 = vadd.f32 %v1054_v45, %v2131_v6 }
 0x496   : > { %v1058_v47 = vsel %vm728_vm0, %v1055_v46, 0.0 }
 0x497   : > { %1059 = vadd.xlane.f32.xlu1 %v1058_v47 }
 0x50a   : > { %v1060_v55 = vpop.xlane.xlu1 %1059 }
 0x50b   : > { %v1068_v56 = vmul.f32 %v1067_v54, %v1060_v55 }
 0x50d   : > { %v1069_v57 = vsub.f32 %v1055_v46, %v1068_v56 }
 0x50f   : > { %v1070_v58 = vmul.f32 %v1069_v57, %v1069_v57 }
 0x511   : > { %v1071_v59 = vsel %vm728_vm0, %v1070_v58, 0.0 }
 0x512   : > { %1072 = vadd.xlane.f32.xlu0 %v1071_v59 }
 0x585   : > { %v1073_v6 = vpop.xlane.xlu0 %1072 }
 0x586   : > { %v1074_v60 = vmul.f32 %v1073_v6, %v1067_v54 }
 0x588   : > { %v1075_v61 = vadd.f32 1e-12, %v1074_v60 }
 0x58a   : > { %1724 = vrsqrt.f32 %v1075_v61  ;;  %vm1082_vm6 = vweird.f32 %v1075_v61 }
 0x590   : > { %v1725_v62 = vpop.eup %1724 }
 0x591   : > { %v1077_v63 = vmul.f32 %v1725_v62, %v1075_v61  ;;  %vm1083_vm5 = vweird.f32 %v1725_v62 }
 0x592   : > { %vm1084_vm7 = vmor %vm1082_vm6, %vm1083_vm5 }
 0x593   : > { %v1078_v0 = vmul.f32 %v1725_v62, %v1077_v63 }
 0x595   : > { %v1079_v1 = vmul.f32 0.5, %v1078_v0 }
 0x597   : > { %v1080_v2 = vsub.f32 1.5, %v1079_v1 }
 0x599   : > { %v1081_v3 = vmul.f32 %v1725_v62, %v1080_v2 }
 0x59b   : > { %v1085_v5 = vsel %vm1084_vm7, %v1725_v62, %v1081_v3 }
 0x59c   : > { %v1086_v8 = vmul.f32 %v1085_v5, %v1069_v57 }
 0x59e   : > { %v1090_v9 = vmul.f32 %v1704_v4, %v1086_v8 }
 0x5a0   : > { %v1094_v10 = vadd.f32 %v1705_v7, %v1090_v9 }
 0x5a2   : > { %1095 = vst.msk [vmem:[#allocation3] sm:$0xff] %vm728_vm0, %v1094_v10  ;;  %v1096_v11 = vpack.c.bf16 %v1094_v10, %v1094_v10 }
 0x5a4   : > { %1098 = vst.msk [vmem:[#allocation4] sm:$0xf] %vm1097_vm8, %v1096_v11 }
 0x5a5 PF: > { %v1579_v12 = vld [vmem:[%s611_s16 + $0x8] sm:$0xff]  ;;  %v1578_v13 = vld [vmem:[%s611_s16] sm:$0xff]  ;;  %vm1121_vm9 = vcmask 261120   ;;  %v1874_v47 = vmov -1.0   ;;  %p1564_p10 = scmp.ne.s32.totalorder %s1840_s26, 1 }
 0x5a6   : > { %1131 = vmatpush.bf16.msra.mxu0 %v1579_v12  ;;  %v1587_v15 = vld [vmem:[%s2120_s6 + $0x38] sm:$0xff]  ;;  %v1586_v16 = vld [vmem:[%s2120_s6 + $0x30] sm:$0xff]  ;;  %v1585_v17 = vld [vmem:[%s2120_s6 + $0x28] sm:$0xff]  ;;  %s2367_s20 = sld [smem:[#allocation33_spill]] (!%p1564_p10) }
 0x5a7   : > { %1230 = vmatpush.bf16.msra.mxu1 %v1587_v15  ;;  %v1584_v18 = vld [vmem:[%s2120_s6 + $0x20] sm:$0xff]  ;;  %v1583_v19 = vld [vmem:[%s2120_s6 + $0x18] sm:$0xff]  ;;  %v1582_v21 = vld [vmem:[%s2120_s6 + $0x10] sm:$0xff]  ;;  %s2368_s13 = sld [smem:[#allocation34_spill]] (!%p1564_p10) }
 0x5a8   : > { %v1726_v20 = vld [vmem:[%s710_s24] ss:$0 sm:$0xff]  ;;  %v1581_v25 = vld [vmem:[%s2120_s6 + $0x8] sm:$0xff] }
 0x5a9   : > { %v1580_v28 = vld [vmem:[%s2120_s6] sm:$0xff]  ;;  %s2366_s6 = sld [smem:[#allocation32_spill]] (!%p1564_p10) }
 0x5aa   : > { %1132 = vmatpush.bf16.msra.mxu0 %v1578_v13  ;;  %v1164_v54 = vld [vmem:[#allocation2] sm:$0xff] }
 0x5ab   : > { %v1100_v14 = vld [vmem:[#allocation4] sm:$0xf]  ;;  %1231 = vmatpush.bf16.msra.mxu1 %v1586_v16 }
 0x5ad   : > { %1531 = vmatmul.msk.bf16.vlgmr.msra.gmra.mxu0 %vm1121_vm9, %v1100_v14 }
 0x5af   : > { %1232 = vmatpush.bf16.msra.mxu1 %v1585_v17 }
 0x5b3   : > { %1233 = vmatpush.bf16.msra.mxu1 %v1584_v18 }
 0x5b7   : > { %1234 = vmatpush.bf16.msra.mxu1 %v1583_v19 }
 0x5bb   : > { %1235 = vmatpush.bf16.msra.mxu1 %v1582_v21 }
 0x5bf   : > { %1236 = vmatpush.bf16.msra.mxu1 %v1581_v25 }
 0x5c3   : > { %1237 = vmatpush.bf16.msra.mxu1 %v1580_v28 }
 0x62a   : > { %v1134_v22 = vpop.f32.mrf.mxu0 }
 0x62b   : > { %v1135_v23 = vadd.f32 %v1726_v20, %v1134_v22 }
 0x62d   : > { %v1139_v24 = vmul.f32 0.70710677, %v1135_v23  ;;  %v1138_v50 = vmul.f32 0.5, %v1135_v23 }
 0x62f   : > { %v1142_v26 = vand.u32 2147483647, %v1139_v24  ;;  %vm1140_vm10 = vcmp.ge.f32.partialorder %v1139_v24, 0.0 }
 0x630   : > { %v1141_v48 = vsel %vm1140_vm10, 1.0, %v1874_v47 }
 0x631   : > { %v1143_v27 = vmul.f32 0.3275911, %v1142_v26  ;;  %v1155_v32 = vsub.f32 0.0, %v1142_v26 }
 0x632   : > { %v1136_v29 = vpop.f32.mrf.mxu0 }
 0x633   : > { %v1144_v30 = vadd.f32 1.0, %v1143_v27  ;;  %v1156_v35 = vmul.f32 %v1155_v32, %v1142_v26 }
 0x635   : > { %1727 = vrcp.f32 %v1144_v30  ;;  %v1157_v38 = vmul.f32 1.442695, %v1156_v35 }
 0x637   : > { %1729 = vpow2.f32 %v1157_v38 }
 0x63b   : > { %v1728_v31 = vpop.eup %1727 }
 0x63c   : > { %v1146_v33 = vmul.f32 1.0614054, %v1728_v31 }
 0x63d   : > { %v1730_v44 = vpop.eup %1729 }
 0x63e   : > { %v1147_v34 = vadd.f32 -1.4531521, %v1146_v33 }
 0x640   : > { %v1148_v36 = vmul.f32 %v1728_v31, %v1147_v34 }
 0x642   : > { %v1149_v37 = vadd.f32 1.4214138, %v1148_v36 }
 0x644   : > { %v1150_v39 = vmul.f32 %v1728_v31, %v1149_v37 }
 0x646   : > { %v1151_v40 = vadd.f32 -0.28449672, %v1150_v39 }
 0x648   : > { %v1152_v41 = vmul.f32 %v1728_v31, %v1151_v40 }
 0x64a   : > { %v1153_v42 = vadd.f32 0.2548296, %v1152_v41 }
 0x64c   : > { %v1154_v43 = vmul.f32 %v1728_v31, %v1153_v42 }
 0x64e   : > { %v1159_v45 = vmul.f32 %v1730_v44, %v1154_v43 }
 0x650   : > { %v1160_v46 = vsub.f32 1.0, %v1159_v45 }
 0x652   : > { %v1161_v49 = vmul.f32 %v1160_v46, %v1141_v48 }
 0x654   : > { %v1162_v51 = vadd.f32 1.0, %v1161_v49 }
 0x656   : > { %v1163_v52 = vmul.f32 %v1162_v51, %v1138_v50 }
 0x658   : > { %v1165_v53 = vpack.c.bf16 %v1163_v52, %v1163_v52 }
 0x65a   : > { %1238 = vmatmul.bf16.vlgmr.msra.gmra.mxu1 %v1165_v53 }
 0x6d7   : > { %v1239_v55 = vpop.f32.mrf.mxu1 }
 0x6d8   : > { %v1243_v56 = vadd.f32 %v1239_v55, %v1164_v54 }
 0x6da   : > { %1244 = vst.msk [vmem:[#allocation2] sm:$0xff] %vm1121_vm9, %v1243_v56 }
 0x6db   : > { %1248 = sbr.rel (%p1564_p10) target bundleno = 2035 (0x7f3), region = 133 }
 0x6df   : > { %v1241_v57 = vpop.f32.mrf.mxu1 }
 0x6e0   : > { %v1731_v59 = vld [vmem:[%s2366_s6] ss:$0 sm:$0xff]  ;;  %v1255_v6 = vld [vmem:[#allocation3] sm:$0xff]  ;;  %v1875_v63 = vmov 32.0  }
 0x6e1   : > { %v1249_v58 = vld [vmem:[#allocation2] sm:$0xff]  ;;  %1734 = vrcp.f32 %v1875_v63 }
 0x6e2   : > { %v1254_v60 = vadd.f32 %v1731_v59, %v1249_v58  ;;  %v1732_v21 = vld [vmem:[%s2367_s20] ss:$0 sm:$0xff] }
 0x6e3   : > { %v1733_v23 = vld [vmem:[%s2368_s13] ss:$0 sm:$0xff] }
 0x6e4   : > { %v1256_v61 = vadd.f32 %v1255_v6, %v1254_v60 }
 0x6e6   : > { %v1259_v62 = vsel %vm1121_vm9, %v1256_v61, 0.0 }
 0x6e7   : > { %1260 = vadd.xlane.f32.xlu0 %v1259_v62  ;;  %v1735_v0 = vpop.eup %1734 }
 0x6e8   : > { %v1263_v1 = vmul.f32 32.0, %v1735_v0  ;;  %vm1267_vm11 = vweird.f32 %v1735_v0 }
 0x6ea   : > { %v1264_v2 = vsub.f32 1.0, %v1263_v1 }
 0x6ec   : > { %v1265_v3 = vmul.f32 %v1735_v0, %v1264_v2 }
 0x6ee   : > { %v1266_v4 = vadd.f32 %v1735_v0, %v1265_v3 }
 0x6f0   : > { %v1268_v5 = vsel %vm1267_vm11, %v1735_v0, %v1266_v4 }
 0x75a   : > { %v1261_v7 = vpop.xlane.xlu0 %1260 }
 0x75b   : > { %v1269_v8 = vmul.f32 %v1268_v5, %v1261_v7 }
 0x75d   : > { %v1270_v9 = vsub.f32 %v1256_v61, %v1269_v8 }
 0x75f   : > { %v1271_v10 = vmul.f32 %v1270_v9, %v1270_v9 }
 0x761   : > { %v1272_v11 = vsel %vm1121_vm9, %v1271_v10, 0.0 }
 0x762   : > { %1273 = vadd.xlane.f32.xlu0 %v1272_v11 }
 0x7d5   : > { %v1274_v12 = vpop.xlane.xlu0 %1273 }
 0x7d6   : > { %v1275_v13 = vmul.f32 %v1274_v12, %v1268_v5 }
 0x7d8   : > { %v1276_v14 = vadd.f32 1e-12, %v1275_v13 }
 0x7da   : > { %1736 = vrsqrt.f32 %v1276_v14  ;;  %vm1283_vm13 = vweird.f32 %v1276_v14 }
 0x7e0   : > { %v1737_v15 = vpop.eup %1736 }
 0x7e1   : > { %v1278_v16 = vmul.f32 %v1737_v15, %v1276_v14  ;;  %vm1284_vm12 = vweird.f32 %v1737_v15 }
 0x7e2   : > { %vm1285_vm14 = vmor %vm1283_vm13, %vm1284_vm12 }
 0x7e3   : > { %v1279_v17 = vmul.f32 %v1737_v15, %v1278_v16 }
 0x7e5   : > { %v1280_v18 = vmul.f32 0.5, %v1279_v17 }
 0x7e7   : > { %v1281_v19 = vsub.f32 1.5, %v1280_v18 }
 0x7e9   : > { %v1282_v20 = vmul.f32 %v1737_v15, %v1281_v19 }
 0x7eb   : > { %v1286_v22 = vsel %vm1285_vm14, %v1737_v15, %v1282_v20 }
 0x7ec   : > { %v1287_v24 = vmul.f32 %v1286_v22, %v1270_v9 }
 0x7ee   : > { %v1291_v25 = vmul.f32 %v1732_v21, %v1287_v24 }
 0x7f0   : > { %v1295_v26 = vadd.f32 %v1733_v23, %v1291_v25 }
 0x7f2   : > { %1296 = vst.msk [vmem:[%s686_s23] sm:$0xff] %vm1121_vm9, %v1295_v26 }
 0x7f3 PF: > { %s2369_s18 = sld [smem:[#allocation13_spill]]  ;;  %s1566_s10 = sshll.u32 %s1848_s28, 1 }
 0x7f4   : > { %s2370_s5 = sld [smem:[#allocation10_spill]]  ;;  %s1312_s8 = sshll.u32 %s686_s23, 4  ;;  %s1313_s8 = int_to_ptr.vmem [resolvable:$true] %s1312_s8 }
 0x7f5   : > { %s2372_s25 = sld [smem:[#allocation35_spill]] }
 0x7f9   : > { %s1308_s7 = sadd.s32 %s2369_s18, %s1566_s10 }
 0x7fa   : > { %s1567_s9 = sshll.u32 %s1308_s7, 3  ;;  %s2374_s24 = sand.u32 1, %s2370_s5  }
 0x7fb   : > { %s2373_s19 = smov %s2372_s25  ;;  %s1310_s15 = scalar_lea.hbm %s2372_s25, %s1567_s9 }
 0x7fc   : > { %s1314_s27 = sshll.u32 %s1310_s15, 4  ;;  %s1298_s6 = scalar_lea.sflag [#allocation7], %s2374_s24  ;;  %s1315_s27 = int_to_ptr.hbm [resolvable:$true] %s1314_s27 }
 0x7fd   : > { %s1752_s26 = sshra.s32 %s1315_s27, 4  ;;  %s1758_s23 = scalar_lea.hbm %s2373_s19, 32  ;;  %s1753_s26 = int_to_ptr.hbm [resolvable:$true] %s1752_s26 }
 0x7fe   : > { %s1754_s16 = scalar_lea.hbm %s1753_s26, 8  ;;  %p1759_p1 = scmp.lt.s32.totalorder %s1753_s26, %s2373_s19 }
 0x7ff   : > { %p1755_p11 = scmp.ne.s32.totalorder %s1753_s26, %s1754_s16  ;;  %p1760_p2 = scmp.lt.s32.totalorder %s1758_s23, %s1754_s16 }
 0x801   : > { %p1756_p12 = pnand %p1755_p11, %p2051_p9  ;;  %p1761_p3 = por %p1760_p2, %p1759_p1 }
 0x803   : > { %p1757_p0 = pneg %p1756_p12 }
 0x805   : > { %p1762_p4 = pnand %p1761_p3, %p1757_p0 }
 0x807   : > { %1765 = shalt.err (!%p1762_p4)
}
 0x808   : > { %1588 = dma.vmem_to_hbm [thread:$0]  (%p2051_p9), %s1313_s8, 128, %s1315_s27, %s1298_s6  }
 0x809 PF: > { %s2375_s17 = sld [smem:[#allocation17_spill]] }
 0x80a   : > { %s2376_s13 = sld [smem:[#allocation9_spill]] }
 0x80f   : > { %p1594_p5 = scmp.ge.s32.totalorder %s2375_s17, 2 }
 0x810   : > { %s1326_s5 = sand.u32 1, %s2376_s13  }
 0x811   : > { %p1591_p6 = pnand %p1594_p5, %p2060_p13  ;;  %s1327_s10 = scalar_lea.sflag [#allocation7], %s1326_s5 }
 0x813   : > { %p1592_p7 = pneg %p1591_p6 }
 0x815   : > { %1815 = dma.done.wait (%p1592_p7), %s1327_s10, 128  }
 0x816   : > { %1817 = vsyncadd (%p1592_p7), %s1327_s10, 4294967168  ;;  %s29_s17 = sadd.s32 1, %s2375_s17   ;;  %s2378_s21 = sld [smem:[#allocation10_spill]] }
 0x817   : > { %p26_p8 = scmp.ge.s32.totalorder %s29_s17, 10   ;;  %s2379_s22 = sld [smem:[#allocation11_spill]] }
 0x818   : > { %s2380_s23 = sld [smem:[#allocation24_spill]] }
 0x819   : > { %s2381_s24 = sld [smem:[#allocation12_spill]] }
 0x81a   : > { %s2382_s25 = sld [smem:[#allocation20_spill]] }
 0x81b   : > { %s2383_s26 = sld [smem:[#allocation14_spill]] }
 0x81c   : > { %s2384_s27 = sld [smem:[#allocation15_spill]]  ;;  %28 = sbr.rel (!%p26_p8) target bundleno = 19 (0x13), region = 191 }
 0x81d   : > { %s2385_s28 = sld [smem:[#allocation16_spill]] }
 0x81e   : > { %s2386_s29 = sld [smem:[#allocation18_spill]] }
 0x81f   : > { %s2387_s30 = sld [smem:[#allocation19_spill]] }
 0x820   : > { %s2388_s0 = sld [smem:[#allocation21_spill]] }
 0x821   :  { %1333 = vsyncpa [#allocation7], 1 }
 0x822   :  { %1335 = vsyncpa [#allocation7 + $0x1], 1 }

</bundles_post_ra>
